<compile_context>
chip_gen: v7x
topology: tpu7x:2x2x1
jax: 0.10.0
libtpu: 0.0.40
codegen_flags: <defaults>
</compile_context>

<pallas_src>
import functools

import jax
import jax.numpy as jnp
from jax import lax
from jax.experimental import pallas as pl
from jax.experimental.pallas import tpu as pltpu


# ----------------------------- parameter prep ------------------------------
def conv1d_tap_weights(w, groups):
    """(Cout, Cin_pg, K) torch conv weight -> (K, Cin, Cout) block-diag taps."""
    cout, cin_pg, k = w.shape
    cin = cin_pg * groups
    cout_pg = cout // groups
    kk, ci_pg, co = jnp.meshgrid(jnp.arange(k), jnp.arange(cin_pg),
                                 jnp.arange(cout), indexing="ij")
    g = co // cout_pg
    ci = g * cin_pg + ci_pg                      # global input channel
    vals = w[co, ci_pg, kk].astype(jnp.float32)
    taps = jnp.zeros((k, cin, cout), jnp.float32).at[kk, ci, co].set(vals)
    return taps


def prepare_sub_msd(params, strides, paddings, groups_list, l_in):
    """Per-layer bf16 taps, (1, Cout) f32 bias, and static layer metadata."""
    taps_list, bias_list, layer_meta = [], [], []
    l = l_in
    for (w, b), s, p, g in zip(params, strides, paddings, groups_list):
        cout, cin_pg, k = w.shape
        cin = cin_pg * g
        l_out = (l + 2 * p - k) // s + 1
        taps_list.append(conv1d_tap_weights(w, g).astype(jnp.bfloat16))
        bias_list.append(b.astype(jnp.float32).reshape(1, cout))
        layer_meta.append((k, s, p, l_out, cin, cout))
        l = l_out
    return taps_list, bias_list, tuple(layer_meta)


def init_sub_msd_params(key, channels, kernel_sizes, groups_list):
    params = []
    for cin, cout, k, g in zip(channels[:-1], channels[1:], kernel_sizes,
                               groups_list):
        key, kw, kb = jax.random.split(key, 3)
        w = 0.1 * jax.random.normal(kw, (cout, cin // g, k), jnp.float32)
        b = 0.1 * jax.random.normal(kb, (cout,), jnp.float32)
        params.append((w, b))
    return params


# --------------------------------- kernel ----------------------------------
def _sub_msd_kernel(*refs, layer_meta):
    """Fused forward for one batch element (grid=(B,), "parallel").

    refs = [x_pad,
            w0, b0, ..., w_{n-1}, b_{n-1},
            o0, ..., o_{n-1},
            pad1, ..., pad_{n-1}]
    x_pad : (L0+2*P0, C0) f32 channels-last, already zero-padded.
    w_i   : (K_i, Cin_i, Cout_i) bf16 block-diagonal per-tap weights.
    b_i   : (1, Cout_i) f32.
    o_i   : (L_out_i, Cout_i) f32 feature map (channels-last).
    pad_i : VMEM scratch (L_in_i + 2*P_i, Cin_i) f32 padded activation buffer.
    """
    n = len(layer_meta)
    x_ref = refs[0]
    w_refs = [refs[1 + 2 * i] for i in range(n)]
    b_refs = [refs[2 + 2 * i] for i in range(n)]
    out_refs = refs[1 + 2 * n: 1 + 3 * n]
    pad_refs = refs[1 + 3 * n:]

    src = x_ref
    for i, (k, s, _p, l_out, cin, cout) in enumerate(layer_meta):
        acc = jnp.zeros((l_out, cout), jnp.float32)
        for kk in range(k):                                   # K = 3 or 5 taps
            if s == 1:
                patch = src[pl.ds(kk, l_out), :]              # (l_out, cin)
            else:
                patch = src[pl.ds(kk, l_out, stride=s), :]    # strided taps
            w_tap = w_refs[i][kk]                             # (cin, cout) bf16
            if cin == 1:
                # Degenerate contraction: outer product on the VPU, with the
                # same bf16 operand rounding as the MXU path.
                acc = acc + (patch.astype(jnp.bfloat16).astype(jnp.float32)
                             * w_tap.astype(jnp.float32))
            else:
                acc = acc + jnp.dot(patch.astype(jnp.bfloat16), w_tap,
                                    preferred_element_type=jnp.float32)
        y = acc + b_refs[i][...]                              # (1,Cout) bcast
        if i != n - 1:
            y = jnp.maximum(y, 0.1 * y)                       # LeakyReLU(0.1)
        out_refs[i][...] = y
        if i != n - 1:
            nxt = pad_refs[i]                                 # next layer input
            p_next = layer_meta[i + 1][2]
            nxt[...] = jnp.zeros_like(nxt)                    # zero padding
            nxt[pl.ds(p_next, l_out), :] = y                  # interior rows
            src = nxt


# -------------------------------- wrapper -----------------------------------
def sub_msd_forward(x, taps_list, bias_list, layer_meta):
    """Returns (flattened last output, feature_map list) like SubMSD.forward."""
    b_sz, c0, l0 = x.shape
    n = len(layer_meta)
    p0 = layer_meta[0][2]
    l_pad0 = l0 + 2 * p0

    x_cl = jnp.transpose(x, (0, 2, 1)).astype(jnp.float32)        # (B, L, C0)
    x_pad = jnp.pad(x_cl, ((0, 0), (p0, p0), (0, 0)))             # (B, Lp0, C0)

    in_specs = [pl.BlockSpec((None, l_pad0, c0), lambda bi: (bi, 0, 0))]
    inputs = [x_pad]
    for taps, bias in zip(taps_list, bias_list):
        in_specs.append(pl.BlockSpec(taps.shape, lambda bi: (0, 0, 0)))
        inputs.append(taps)
        in_specs.append(pl.BlockSpec(bias.shape, lambda bi: (0, 0)))
        inputs.append(bias)

    out_specs, out_shape = [], []
    for (_k, _s, _p, l_out, _cin, cout) in layer_meta:
        out_specs.append(pl.BlockSpec((None, l_out, cout), lambda bi: (bi, 0, 0)))
        out_shape.append(jax.ShapeDtypeStruct((b_sz, l_out, cout), jnp.float32))

    scratch_shapes = []
    for i in range(1, n):
        _k, _s, p, _lo, cin, _co = layer_meta[i]
        l_in_i = layer_meta[i - 1][3]
        scratch_shapes.append(pltpu.VMEM((l_in_i + 2 * p, cin), jnp.float32))

    flops = 0
    bytes_accessed = x_pad.size * 4
    for (k, _s, _p, l_out, cin, cout), taps, bias in zip(layer_meta, taps_list,
                                                         bias_list):
        flops += 2 * b_sz * l_out * cout * cin * k       # block-diag dense MACs
        bytes_accessed += taps.size * 2 + bias.size * 4 + b_sz * l_out * cout * 4

    outs = pl.pallas_call(
        functools.partial(_sub_msd_kernel, layer_meta=layer_meta),
        grid=(b_sz,),
        out_shape=tuple(out_shape),
        in_specs=in_specs,
        out_specs=tuple(out_specs),
        scratch_shapes=scratch_shapes,
        compiler_params=pltpu.CompilerParams(
            dimension_semantics=("parallel",),        # v7x: shard batch over TCs
            vmem_limit_bytes=16 * 1024 * 1024),
        cost_estimate=pl.CostEstimate(flops=int(flops), transcendentals=0,
                                      bytes_accessed=int(bytes_accessed)),
    )(*inputs)

    feature_map = [jnp.transpose(o, (0, 2, 1)) for o in outs]     # (B, C, L)
    flat = feature_map[-1].reshape(b_sz, -1)     # == torch.flatten(x, 1, -1)
    return flat, feature_map


# --------------- pure-JAX reference (correctness check only) ---------------
def _conv1d_ref(x, w, b, stride, padding, groups):
    y = lax.conv_general_dilated(
        x, w, window_strides=(stride,), padding=[(padding, padding)],
        dimension_numbers=('NCH', 'OIH', 'NCH'), feature_group_count=groups,
        precision=lax.Precision.HIGHEST)
    return y + b[None, :, None]


def _sub_msd_ref(x, params, strides, paddings, groups_list, mxu_bf16=False):
    """mxu_bf16=True mirrors the kernel's bf16 MXU-operand rounding exactly."""
    feats = []
    n = len(params)
    h = x
    for i, (w, b) in enumerate(params):
        if mxu_bf16:
            h_in = h.astype(jnp.bfloat16).astype(jnp.float32)
            w_in = w.astype(jnp.bfloat16).astype(jnp.float32)
        else:
            h_in, w_in = h, w
        h = _conv1d_ref(h_in, w_in, b, strides[i], paddings[i], groups_list[i])
        if i != n - 1:
            h = jnp.where(h > 0, h, 0.1 * h)
        feats.append(h)
    return h.reshape(h.shape[0], -1), feats


if __name__ == "__main__":
    # Small SubMSD config (HiFi-GAN-MSD-like, scaled down).
    channels     = [1, 8, 16, 16, 4]
    kernel_sizes = [5, 5, 5, 3]
    strides      = [1, 2, 2, 1]
    groups_list  = [1, 2, 4, 1]
    paddings     = [2, 2, 2, 1]

    key = jax.random.PRNGKey(0)
    key, kx, kp = jax.random.split(key, 3)
    B, L = 2, 64
    x = jax.random.normal(kx, (B, channels[0], L), jnp.float32)   # (B, C, T)

    params = init_sub_msd_params(kp, channels, kernel_sizes, groups_list)
    taps_list, bias_list, layer_meta = prepare_sub_msd(
        params, strides, paddings, groups_list, L)

    @jax.jit
    def fwd(inp):
        return sub_msd_forward(inp, taps_list, bias_list, layer_meta)

    out, feats = fwd(x)
    out = jax.block_until_ready(out)
    feats = [jax.block_until_ready(f) for f in feats]

    # Tight check: reference with the same bf16 MXU-operand rounding.
    ref_out_q, ref_feats_q = _sub_msd_ref(x, params, strides, paddings,
                                          groups_list, mxu_bf16=True)
    # Loose check: pure-f32 (PyTorch) semantics; gap == bf16 operand rounding.
    ref_out_f, _ = _sub_msd_ref(x, params, strides, paddings, groups_list,
                                mxu_bf16=False)

    assert out.shape == ref_out_q.shape
    assert all(f.shape == rf.shape for f, rf in zip(feats, ref_feats_q))
    assert jnp.allclose(out, ref_out_q, atol=2e-3, rtol=2e-3), \
        float(jnp.max(jnp.abs(out - ref_out_q)))
    for f, rf in zip(feats, ref_feats_q):
        assert jnp.allclose(f, rf, atol=2e-3, rtol=2e-3), \
            float(jnp.max(jnp.abs(f - rf)))
    assert jnp.allclose(out, ref_out_f, atol=2e-2, rtol=2e-2), \
        float(jnp.max(jnp.abs(out - ref_out_f)))

    print("KERNEL_OK")
</pallas_src>

<mosaic_0001>
module attributes {stable_mosaic.version = 11 : i64} {
  func.func @_sub_msd_kernel(%arg0: i32, %arg1: memref<1x68x1xf32, #tpu.memory_space<vmem>>, %arg2: memref<5x1x8xbf16, #tpu.memory_space<vmem>>, %arg3: memref<1x8xf32, #tpu.memory_space<vmem>>, %arg4: memref<5x8x16xbf16, #tpu.memory_space<vmem>>, %arg5: memref<1x16xf32, #tpu.memory_space<vmem>>, %arg6: memref<5x16x16xbf16, #tpu.memory_space<vmem>>, %arg7: memref<1x16xf32, #tpu.memory_space<vmem>>, %arg8: memref<3x16x4xbf16, #tpu.memory_space<vmem>>, %arg9: memref<1x4xf32, #tpu.memory_space<vmem>>, %arg10: memref<1x64x8xf32, #tpu.memory_space<vmem>>, %arg11: memref<1x32x16xf32, #tpu.memory_space<vmem>>, %arg12: memref<1x16x16xf32, #tpu.memory_space<vmem>>, %arg13: memref<1x16x4xf32, #tpu.memory_space<vmem>>, %arg14: memref<68x8xf32, #tpu.memory_space<vmem>>, %arg15: memref<36x16xf32, #tpu.memory_space<vmem>>, %arg16: memref<18x16xf32, #tpu.memory_space<vmem>>) attributes {dimension_semantics = [#tpu.dimension_semantics<parallel>], iteration_bounds = array<i64: 2>, scalar_prefetch = 0 : i64, scratch_operands = 3 : i64, tpu.core_type = #tpu.core_type<tc>, window_params = [{transform_indices = @transform_0, window_bounds = array<i64: 1, 68, 1>}, {pipeline_mode = #tpu.pipeline_mode<synchronous>, transform_indices = @transform_1, window_bounds = array<i64: 5, 1, 8>}, {pipeline_mode = #tpu.pipeline_mode<synchronous>, transform_indices = @transform_2, window_bounds = array<i64: 1, 8>}, {pipeline_mode = #tpu.pipeline_mode<synchronous>, transform_indices = @transform_3, window_bounds = array<i64: 5, 8, 16>}, {pipeline_mode = #tpu.pipeline_mode<synchronous>, transform_indices = @transform_4, window_bounds = array<i64: 1, 16>}, {pipeline_mode = #tpu.pipeline_mode<synchronous>, transform_indices = @transform_5, window_bounds = array<i64: 5, 16, 16>}, {pipeline_mode = #tpu.pipeline_mode<synchronous>, transform_indices = @transform_6, window_bounds = array<i64: 1, 16>}, {pipeline_mode = #tpu.pipeline_mode<synchronous>, transform_indices = @transform_7, window_bounds = array<i64: 3, 16, 4>}, {pipeline_mode = #tpu.pipeline_mode<synchronous>, transform_indices = @transform_8, window_bounds = array<i64: 1, 4>}, {transform_indices = @transform_9, window_bounds = array<i64: 1, 64, 8>}, {transform_indices = @transform_10, window_bounds = array<i64: 1, 32, 16>}, {transform_indices = @transform_11, window_bounds = array<i64: 1, 16, 16>}, {transform_indices = @transform_12, window_bounds = array<i64: 1, 16, 4>}]} {
    %cst = arith.constant 0.000000e+00 : f32
    %0 = vector.broadcast %cst : f32 to vector<64x8xf32>
    %c0 = arith.constant 0 : index
    %c0_0 = arith.constant 0 : index
    %c0_1 = arith.constant 0 : index
    %1 = vector.load %arg1[%c0, %c0_0, %c0_1] : memref<1x68x1xf32, #tpu.memory_space<vmem>>, vector<1x64x1xf32>
    %2 = vector.shape_cast %1 : vector<1x64x1xf32> to vector<64x1xf32>
    %c0_2 = arith.constant 0 : index
    %c0_3 = arith.constant 0 : index
    %c0_4 = arith.constant 0 : index
    %3 = vector.load %arg2[%c0_2, %c0_3, %c0_4] : memref<5x1x8xbf16, #tpu.memory_space<vmem>>, vector<1x1x8xbf16>
    %4 = vector.shape_cast %3 : vector<1x1x8xbf16> to vector<1x8xbf16>
    %5 = arith.truncf %2 : vector<64x1xf32> to vector<64x1xbf16>
    %6 = arith.extf %5 : vector<64x1xbf16> to vector<64x1xf32>
    %7 = arith.extf %4 : vector<1x8xbf16> to vector<1x8xf32>
    %8 = vector.broadcast %6 : vector<64x1xf32> to vector<64x8xf32>
    %9 = vector.broadcast %7 : vector<1x8xf32> to vector<64x8xf32>
    %10 = arith.mulf %8, %9 : vector<64x8xf32>
    %11 = arith.addf %0, %10 : vector<64x8xf32>
    %c0_5 = arith.constant 0 : index
    %c1 = arith.constant 1 : index
    %c0_6 = arith.constant 0 : index
    %12 = vector.load %arg1[%c0_5, %c1, %c0_6] : memref<1x68x1xf32, #tpu.memory_space<vmem>>, vector<1x64x1xf32>
    %13 = vector.shape_cast %12 : vector<1x64x1xf32> to vector<64x1xf32>
    %c1_7 = arith.constant 1 : index
    %c0_8 = arith.constant 0 : index
    %c0_9 = arith.constant 0 : index
    %14 = vector.load %arg2[%c1_7, %c0_8, %c0_9] : memref<5x1x8xbf16, #tpu.memory_space<vmem>>, vector<1x1x8xbf16>
    %15 = vector.shape_cast %14 : vector<1x1x8xbf16> to vector<1x8xbf16>
    %16 = arith.truncf %13 : vector<64x1xf32> to vector<64x1xbf16>
    %17 = arith.extf %16 : vector<64x1xbf16> to vector<64x1xf32>
    %18 = arith.extf %15 : vector<1x8xbf16> to vector<1x8xf32>
    %19 = vector.broadcast %17 : vector<64x1xf32> to vector<64x8xf32>
    %20 = vector.broadcast %18 : vector<1x8xf32> to vector<64x8xf32>
    %21 = arith.mulf %19, %20 : vector<64x8xf32>
    %22 = arith.addf %11, %21 : vector<64x8xf32>
    %c0_10 = arith.constant 0 : index
    %c2 = arith.constant 2 : index
    %c0_11 = arith.constant 0 : index
    %23 = vector.load %arg1[%c0_10, %c2, %c0_11] : memref<1x68x1xf32, #tpu.memory_space<vmem>>, vector<1x64x1xf32>
    %24 = vector.shape_cast %23 : vector<1x64x1xf32> to vector<64x1xf32>
    %c2_12 = arith.constant 2 : index
    %c0_13 = arith.constant 0 : index
    %c0_14 = arith.constant 0 : index
    %25 = vector.load %arg2[%c2_12, %c0_13, %c0_14] : memref<5x1x8xbf16, #tpu.memory_space<vmem>>, vector<1x1x8xbf16>
    %26 = vector.shape_cast %25 : vector<1x1x8xbf16> to vector<1x8xbf16>
    %27 = arith.truncf %24 : vector<64x1xf32> to vector<64x1xbf16>
    %28 = arith.extf %27 : vector<64x1xbf16> to vector<64x1xf32>
    %29 = arith.extf %26 : vector<1x8xbf16> to vector<1x8xf32>
    %30 = vector.broadcast %28 : vector<64x1xf32> to vector<64x8xf32>
    %31 = vector.broadcast %29 : vector<1x8xf32> to vector<64x8xf32>
    %32 = arith.mulf %30, %31 : vector<64x8xf32>
    %33 = arith.addf %22, %32 : vector<64x8xf32>
    %c0_15 = arith.constant 0 : index
    %c3 = arith.constant 3 : index
    %c0_16 = arith.constant 0 : index
    %34 = vector.load %arg1[%c0_15, %c3, %c0_16] : memref<1x68x1xf32, #tpu.memory_space<vmem>>, vector<1x64x1xf32>
    %35 = vector.shape_cast %34 : vector<1x64x1xf32> to vector<64x1xf32>
    %c3_17 = arith.constant 3 : index
    %c0_18 = arith.constant 0 : index
    %c0_19 = arith.constant 0 : index
    %36 = vector.load %arg2[%c3_17, %c0_18, %c0_19] : memref<5x1x8xbf16, #tpu.memory_space<vmem>>, vector<1x1x8xbf16>
    %37 = vector.shape_cast %36 : vector<1x1x8xbf16> to vector<1x8xbf16>
    %38 = arith.truncf %35 : vector<64x1xf32> to vector<64x1xbf16>
    %39 = arith.extf %38 : vector<64x1xbf16> to vector<64x1xf32>
    %40 = arith.extf %37 : vector<1x8xbf16> to vector<1x8xf32>
    %41 = vector.broadcast %39 : vector<64x1xf32> to vector<64x8xf32>
    %42 = vector.broadcast %40 : vector<1x8xf32> to vector<64x8xf32>
    %43 = arith.mulf %41, %42 : vector<64x8xf32>
    %44 = arith.addf %33, %43 : vector<64x8xf32>
    %c0_20 = arith.constant 0 : index
    %c4 = arith.constant 4 : index
    %c0_21 = arith.constant 0 : index
    %45 = vector.load %arg1[%c0_20, %c4, %c0_21] : memref<1x68x1xf32, #tpu.memory_space<vmem>>, vector<1x64x1xf32>
    %46 = vector.shape_cast %45 : vector<1x64x1xf32> to vector<64x1xf32>
    %c4_22 = arith.constant 4 : index
    %c0_23 = arith.constant 0 : index
    %c0_24 = arith.constant 0 : index
    %47 = vector.load %arg2[%c4_22, %c0_23, %c0_24] : memref<5x1x8xbf16, #tpu.memory_space<vmem>>, vector<1x1x8xbf16>
    %48 = vector.shape_cast %47 : vector<1x1x8xbf16> to vector<1x8xbf16>
    %49 = arith.truncf %46 : vector<64x1xf32> to vector<64x1xbf16>
    %50 = arith.extf %49 : vector<64x1xbf16> to vector<64x1xf32>
    %51 = arith.extf %48 : vector<1x8xbf16> to vector<1x8xf32>
    %52 = vector.broadcast %50 : vector<64x1xf32> to vector<64x8xf32>
    %53 = vector.broadcast %51 : vector<1x8xf32> to vector<64x8xf32>
    %54 = arith.mulf %52, %53 : vector<64x8xf32>
    %55 = arith.addf %44, %54 : vector<64x8xf32>
    %c0_25 = arith.constant 0 : index
    %c0_26 = arith.constant 0 : index
    %56 = vector.load %arg3[%c0_25, %c0_26] : memref<1x8xf32, #tpu.memory_space<vmem>>, vector<1x8xf32>
    %57 = vector.broadcast %56 : vector<1x8xf32> to vector<64x8xf32>
    %58 = arith.addf %55, %57 : vector<64x8xf32>
    %cst_27 = arith.constant 1.000000e-01 : f32
    %59 = vector.broadcast %cst_27 : f32 to vector<64x8xf32>
    %60 = arith.mulf %59, %58 : vector<64x8xf32>
    %61 = arith.maximumf %58, %60 : vector<64x8xf32>
    %c0_28 = arith.constant 0 : index
    %c0_29 = arith.constant 0 : index
    %c0_30 = arith.constant 0 : index
    %62 = vector.load %arg10[%c0_28, %c0_29, %c0_30] : memref<1x64x8xf32, #tpu.memory_space<vmem>>, vector<1x64x8xf32>
    %63 = vector.shape_cast %62 : vector<1x64x8xf32> to vector<64x8xf32>
    %64 = vector.shape_cast %61 : vector<64x8xf32> to vector<1x64x8xf32>
    tpu.vector_store %arg10[%c0_28, %c0_29, %c0_30], %64 {strides = array<i32>} : memref<1x64x8xf32, #tpu.memory_space<vmem>>, vector<1x64x8xf32>,
    %cst_31 = arith.constant 0.000000e+00 : f32
    %65 = vector.broadcast %cst_31 : f32 to vector<68x8xf32>
    %c0_32 = arith.constant 0 : index
    %c0_33 = arith.constant 0 : index
    %66 = vector.load %arg14[%c0_32, %c0_33] : memref<68x8xf32, #tpu.memory_space<vmem>>, vector<68x8xf32>
    tpu.vector_store %arg14[%c0_32, %c0_33], %65 {strides = array<i32>} : memref<68x8xf32, #tpu.memory_space<vmem>>, vector<68x8xf32>,
    %c2_34 = arith.constant 2 : index
    %c0_35 = arith.constant 0 : index
    %67 = vector.load %arg14[%c2_34, %c0_35] : memref<68x8xf32, #tpu.memory_space<vmem>>, vector<64x8xf32>
    tpu.vector_store %arg14[%c2_34, %c0_35], %61 {strides = array<i32>} : memref<68x8xf32, #tpu.memory_space<vmem>>, vector<64x8xf32>,
    %cst_36 = arith.constant 0.000000e+00 : f32
    %68 = vector.broadcast %cst_36 : f32 to vector<32x16xf32>
    %c0_37 = arith.constant 0 : index
    %c0_38 = arith.constant 0 : index
    %69 = tpu.strided_load %arg14[%c0_37, %c0_38] {strides = array<i32: 2, 1>} : memref<68x8xf32, #tpu.memory_space<vmem>>, vector<32x8xf32>
    %c0_39 = arith.constant 0 : index
    %c0_40 = arith.constant 0 : index
    %c0_41 = arith.constant 0 : index
    %70 = vector.load %arg4[%c0_39, %c0_40, %c0_41] : memref<5x8x16xbf16, #tpu.memory_space<vmem>>, vector<1x8x16xbf16>
    %71 = vector.shape_cast %70 : vector<1x8x16xbf16> to vector<8x16xbf16>
    %72 = arith.truncf %69 : vector<32x8xf32> to vector<32x8xbf16>
    %cst_42 = arith.constant dense<0.000000e+00> : vector<32x16xf32>
    %73 = tpu.matmul %72, %71, %cst_42 {dimension_numbers = #tpu.dot_dimension_numbers<[1], [0], [0], [1], [0, 0, 1, 1], [], []>} : vector<32x8xbf16>, vector<8x16xbf16>, vector<32x16xf32> -> vector<32x16xf32>
    %74 = arith.addf %68, %73 : vector<32x16xf32>
    %c1_43 = arith.constant 1 : index
    %c0_44 = arith.constant 0 : index
    %75 = tpu.strided_load %arg14[%c1_43, %c0_44] {strides = array<i32: 2, 1>} : memref<68x8xf32, #tpu.memory_space<vmem>>, vector<32x8xf32>
    %c1_45 = arith.constant 1 : index
    %c0_46 = arith.constant 0 : index
    %c0_47 = arith.constant 0 : index
    %76 = vector.load %arg4[%c1_45, %c0_46, %c0_47] : memref<5x8x16xbf16, #tpu.memory_space<vmem>>, vector<1x8x16xbf16>
    %77 = vector.shape_cast %76 : vector<1x8x16xbf16> to vector<8x16xbf16>
    %78 = arith.truncf %75 : vector<32x8xf32> to vector<32x8xbf16>
    %cst_48 = arith.constant dense<0.000000e+00> : vector<32x16xf32>
    %79 = tpu.matmul %78, %77, %cst_48 {dimension_numbers = #tpu.dot_dimension_numbers<[1], [0], [0], [1], [0, 0, 1, 1], [], []>} : vector<32x8xbf16>, vector<8x16xbf16>, vector<32x16xf32> -> vector<32x16xf32>
    %80 = arith.addf %74, %79 : vector<32x16xf32>
    %c2_49 = arith.constant 2 : index
    %c0_50 = arith.constant 0 : index
    %81 = tpu.strided_load %arg14[%c2_49, %c0_50] {strides = array<i32: 2, 1>} : memref<68x8xf32, #tpu.memory_space<vmem>>, vector<32x8xf32>
    %c2_51 = arith.constant 2 : index
    %c0_52 = arith.constant 0 : index
    %c0_53 = arith.constant 0 : index
    %82 = vector.load %arg4[%c2_51, %c0_52, %c0_53] : memref<5x8x16xbf16, #tpu.memory_space<vmem>>, vector<1x8x16xbf16>
    %83 = vector.shape_cast %82 : vector<1x8x16xbf16> to vector<8x16xbf16>
    %84 = arith.truncf %81 : vector<32x8xf32> to vector<32x8xbf16>
    %cst_54 = arith.constant dense<0.000000e+00> : vector<32x16xf32>
    %85 = tpu.matmul %84, %83, %cst_54 {dimension_numbers = #tpu.dot_dimension_numbers<[1], [0], [0], [1], [0, 0, 1, 1], [], []>} : vector<32x8xbf16>, vector<8x16xbf16>, vector<32x16xf32> -> vector<32x16xf32>
    %86 = arith.addf %80, %85 : vector<32x16xf32>
    %c3_55 = arith.constant 3 : index
    %c0_56 = arith.constant 0 : index
    %87 = tpu.strided_load %arg14[%c3_55, %c0_56] {strides = array<i32: 2, 1>} : memref<68x8xf32, #tpu.memory_space<vmem>>, vector<32x8xf32>
    %c3_57 = arith.constant 3 : index
    %c0_58 = arith.constant 0 : index
    %c0_59 = arith.constant 0 : index
    %88 = vector.load %arg4[%c3_57, %c0_58, %c0_59] : memref<5x8x16xbf16, #tpu.memory_space<vmem>>, vector<1x8x16xbf16>
    %89 = vector.shape_cast %88 : vector<1x8x16xbf16> to vector<8x16xbf16>
    %90 = arith.truncf %87 : vector<32x8xf32> to vector<32x8xbf16>
    %cst_60 = arith.constant dense<0.000000e+00> : vector<32x16xf32>
    %91 = tpu.matmul %90, %89, %cst_60 {dimension_numbers = #tpu.dot_dimension_numbers<[1], [0], [0], [1], [0, 0, 1, 1], [], []>} : vector<32x8xbf16>, vector<8x16xbf16>, vector<32x16xf32> -> vector<32x16xf32>
    %92 = arith.addf %86, %91 : vector<32x16xf32>
    %c4_61 = arith.constant 4 : index
    %c0_62 = arith.constant 0 : index
    %93 = tpu.strided_load %arg14[%c4_61, %c0_62] {strides = array<i32: 2, 1>} : memref<68x8xf32, #tpu.memory_space<vmem>>, vector<32x8xf32>
    %c4_63 = arith.constant 4 : index
    %c0_64 = arith.constant 0 : index
    %c0_65 = arith.constant 0 : index
    %94 = vector.load %arg4[%c4_63, %c0_64, %c0_65] : memref<5x8x16xbf16, #tpu.memory_space<vmem>>, vector<1x8x16xbf16>
    %95 = vector.shape_cast %94 : vector<1x8x16xbf16> to vector<8x16xbf16>
    %96 = arith.truncf %93 : vector<32x8xf32> to vector<32x8xbf16>
    %cst_66 = arith.constant dense<0.000000e+00> : vector<32x16xf32>
    %97 = tpu.matmul %96, %95, %cst_66 {dimension_numbers = #tpu.dot_dimension_numbers<[1], [0], [0], [1], [0, 0, 1, 1], [], []>} : vector<32x8xbf16>, vector<8x16xbf16>, vector<32x16xf32> -> vector<32x16xf32>
    %98 = arith.addf %92, %97 : vector<32x16xf32>
    %c0_67 = arith.constant 0 : index
    %c0_68 = arith.constant 0 : index
    %99 = vector.load %arg5[%c0_67, %c0_68] : memref<1x16xf32, #tpu.memory_space<vmem>>, vector<1x16xf32>
    %100 = vector.broadcast %99 : vector<1x16xf32> to vector<32x16xf32>
    %101 = arith.addf %98, %100 : vector<32x16xf32>
    %cst_69 = arith.constant 1.000000e-01 : f32
    %102 = vector.broadcast %cst_69 : f32 to vector<32x16xf32>
    %103 = arith.mulf %102, %101 : vector<32x16xf32>
    %104 = arith.maximumf %101, %103 : vector<32x16xf32>
    %c0_70 = arith.constant 0 : index
    %c0_71 = arith.constant 0 : index
    %c0_72 = arith.constant 0 : index
    %105 = vector.load %arg11[%c0_70, %c0_71, %c0_72] : memref<1x32x16xf32, #tpu.memory_space<vmem>>, vector<1x32x16xf32>
    %106 = vector.shape_cast %105 : vector<1x32x16xf32> to vector<32x16xf32>
    %107 = vector.shape_cast %104 : vector<32x16xf32> to vector<1x32x16xf32>
    tpu.vector_store %arg11[%c0_70, %c0_71, %c0_72], %107 {strides = array<i32>} : memref<1x32x16xf32, #tpu.memory_space<vmem>>, vector<1x32x16xf32>,
    %cst_73 = arith.constant 0.000000e+00 : f32
    %108 = vector.broadcast %cst_73 : f32 to vector<36x16xf32>
    %c0_74 = arith.constant 0 : index
    %c0_75 = arith.constant 0 : index
    %109 = vector.load %arg15[%c0_74, %c0_75] : memref<36x16xf32, #tpu.memory_space<vmem>>, vector<36x16xf32>
    tpu.vector_store %arg15[%c0_74, %c0_75], %108 {strides = array<i32>} : memref<36x16xf32, #tpu.memory_space<vmem>>, vector<36x16xf32>,
    %c2_76 = arith.constant 2 : index
    %c0_77 = arith.constant 0 : index
    %110 = vector.load %arg15[%c2_76, %c0_77] : memref<36x16xf32, #tpu.memory_space<vmem>>, vector<32x16xf32>
    tpu.vector_store %arg15[%c2_76, %c0_77], %104 {strides = array<i32>} : memref<36x16xf32, #tpu.memory_space<vmem>>, vector<32x16xf32>,
    %cst_78 = arith.constant 0.000000e+00 : f32
    %111 = vector.broadcast %cst_78 : f32 to vector<16x16xf32>
    %c0_79 = arith.constant 0 : index
    %c0_80 = arith.constant 0 : index
    %112 = tpu.strided_load %arg15[%c0_79, %c0_80] {strides = array<i32: 2, 1>} : memref<36x16xf32, #tpu.memory_space<vmem>>, vector<16x16xf32>
    %c0_81 = arith.constant 0 : index
    %c0_82 = arith.constant 0 : index
    %c0_83 = arith.constant 0 : index
    %113 = vector.load %arg6[%c0_81, %c0_82, %c0_83] : memref<5x16x16xbf16, #tpu.memory_space<vmem>>, vector<1x16x16xbf16>
    %114 = vector.shape_cast %113 : vector<1x16x16xbf16> to vector<16x16xbf16>
    %115 = arith.truncf %112 : vector<16x16xf32> to vector<16x16xbf16>
    %cst_84 = arith.constant dense<0.000000e+00> : vector<16x16xf32>
    %116 = tpu.matmul %115, %114, %cst_84 {dimension_numbers = #tpu.dot_dimension_numbers<[1], [0], [0], [1], [0, 0, 1, 1], [], []>} : vector<16x16xbf16>, vector<16x16xbf16>, vector<16x16xf32> -> vector<16x16xf32>
    %117 = arith.addf %111, %116 : vector<16x16xf32>
    %c1_85 = arith.constant 1 : index
    %c0_86 = arith.constant 0 : index
    %118 = tpu.strided_load %arg15[%c1_85, %c0_86] {strides = array<i32: 2, 1>} : memref<36x16xf32, #tpu.memory_space<vmem>>, vector<16x16xf32>
    %c1_87 = arith.constant 1 : index
    %c0_88 = arith.constant 0 : index
    %c0_89 = arith.constant 0 : index
    %119 = vector.load %arg6[%c1_87, %c0_88, %c0_89] : memref<5x16x16xbf16, #tpu.memory_space<vmem>>, vector<1x16x16xbf16>
    %120 = vector.shape_cast %119 : vector<1x16x16xbf16> to vector<16x16xbf16>
    %121 = arith.truncf %118 : vector<16x16xf32> to vector<16x16xbf16>
    %cst_90 = arith.constant dense<0.000000e+00> : vector<16x16xf32>
    %122 = tpu.matmul %121, %120, %cst_90 {dimension_numbers = #tpu.dot_dimension_numbers<[1], [0], [0], [1], [0, 0, 1, 1], [], []>} : vector<16x16xbf16>, vector<16x16xbf16>, vector<16x16xf32> -> vector<16x16xf32>
    %123 = arith.addf %117, %122 : vector<16x16xf32>
    %c2_91 = arith.constant 2 : index
    %c0_92 = arith.constant 0 : index
    %124 = tpu.strided_load %arg15[%c2_91, %c0_92] {strides = array<i32: 2, 1>} : memref<36x16xf32, #tpu.memory_space<vmem>>, vector<16x16xf32>
    %c2_93 = arith.constant 2 : index
    %c0_94 = arith.constant 0 : index
    %c0_95 = arith.constant 0 : index
    %125 = vector.load %arg6[%c2_93, %c0_94, %c0_95] : memref<5x16x16xbf16, #tpu.memory_space<vmem>>, vector<1x16x16xbf16>
    %126 = vector.shape_cast %125 : vector<1x16x16xbf16> to vector<16x16xbf16>
    %127 = arith.truncf %124 : vector<16x16xf32> to vector<16x16xbf16>
    %cst_96 = arith.constant dense<0.000000e+00> : vector<16x16xf32>
    %128 = tpu.matmul %127, %126, %cst_96 {dimension_numbers = #tpu.dot_dimension_numbers<[1], [0], [0], [1], [0, 0, 1, 1], [], []>} : vector<16x16xbf16>, vector<16x16xbf16>, vector<16x16xf32> -> vector<16x16xf32>
    %129 = arith.addf %123, %128 : vector<16x16xf32>
    %c3_97 = arith.constant 3 : index
    %c0_98 = arith.constant 0 : index
    %130 = tpu.strided_load %arg15[%c3_97, %c0_98] {strides = array<i32: 2, 1>} : memref<36x16xf32, #tpu.memory_space<vmem>>, vector<16x16xf32>
    %c3_99 = arith.constant 3 : index
    %c0_100 = arith.constant 0 : index
    %c0_101 = arith.constant 0 : index
    %131 = vector.load %arg6[%c3_99, %c0_100, %c0_101] : memref<5x16x16xbf16, #tpu.memory_space<vmem>>, vector<1x16x16xbf16>
    %132 = vector.shape_cast %131 : vector<1x16x16xbf16> to vector<16x16xbf16>
    %133 = arith.truncf %130 : vector<16x16xf32> to vector<16x16xbf16>
    %cst_102 = arith.constant dense<0.000000e+00> : vector<16x16xf32>
    %134 = tpu.matmul %133, %132, %cst_102 {dimension_numbers = #tpu.dot_dimension_numbers<[1], [0], [0], [1], [0, 0, 1, 1], [], []>} : vector<16x16xbf16>, vector<16x16xbf16>, vector<16x16xf32> -> vector<16x16xf32>
    %135 = arith.addf %129, %134 : vector<16x16xf32>
    %c4_103 = arith.constant 4 : index
    %c0_104 = arith.constant 0 : index
    %136 = tpu.strided_load %arg15[%c4_103, %c0_104] {strides = array<i32: 2, 1>} : memref<36x16xf32, #tpu.memory_space<vmem>>, vector<16x16xf32>
    %c4_105 = arith.constant 4 : index
    %c0_106 = arith.constant 0 : index
    %c0_107 = arith.constant 0 : index
    %137 = vector.load %arg6[%c4_105, %c0_106, %c0_107] : memref<5x16x16xbf16, #tpu.memory_space<vmem>>, vector<1x16x16xbf16>
    %138 = vector.shape_cast %137 : vector<1x16x16xbf16> to vector<16x16xbf16>
    %139 = arith.truncf %136 : vector<16x16xf32> to vector<16x16xbf16>
    %cst_108 = arith.constant dense<0.000000e+00> : vector<16x16xf32>
    %140 = tpu.matmul %139, %138, %cst_108 {dimension_numbers = #tpu.dot_dimension_numbers<[1], [0], [0], [1], [0, 0, 1, 1], [], []>} : vector<16x16xbf16>, vector<16x16xbf16>, vector<16x16xf32> -> vector<16x16xf32>
    %141 = arith.addf %135, %140 : vector<16x16xf32>
    %c0_109 = arith.constant 0 : index
    %c0_110 = arith.constant 0 : index
    %142 = vector.load %arg7[%c0_109, %c0_110] : memref<1x16xf32, #tpu.memory_space<vmem>>, vector<1x16xf32>
    %143 = vector.broadcast %142 : vector<1x16xf32> to vector<16x16xf32>
    %144 = arith.addf %141, %143 : vector<16x16xf32>
    %cst_111 = arith.constant 1.000000e-01 : f32
    %145 = vector.broadcast %cst_111 : f32 to vector<16x16xf32>
    %146 = arith.mulf %145, %144 : vector<16x16xf32>
    %147 = arith.maximumf %144, %146 : vector<16x16xf32>
    %c0_112 = arith.constant 0 : index
    %c0_113 = arith.constant 0 : index
    %c0_114 = arith.constant 0 : index
    %148 = vector.load %arg12[%c0_112, %c0_113, %c0_114] : memref<1x16x16xf32, #tpu.memory_space<vmem>>, vector<1x16x16xf32>
    %149 = vector.shape_cast %148 : vector<1x16x16xf32> to vector<16x16xf32>
    %150 = vector.shape_cast %147 : vector<16x16xf32> to vector<1x16x16xf32>
    tpu.vector_store %arg12[%c0_112, %c0_113, %c0_114], %150 {strides = array<i32>} : memref<1x16x16xf32, #tpu.memory_space<vmem>>, vector<1x16x16xf32>,
    %cst_115 = arith.constant 0.000000e+00 : f32
    %151 = vector.broadcast %cst_115 : f32 to vector<18x16xf32>
    %c0_116 = arith.constant 0 : index
    %c0_117 = arith.constant 0 : index
    %152 = vector.load %arg16[%c0_116, %c0_117] : memref<18x16xf32, #tpu.memory_space<vmem>>, vector<18x16xf32>
    tpu.vector_store %arg16[%c0_116, %c0_117], %151 {strides = array<i32>} : memref<18x16xf32, #tpu.memory_space<vmem>>, vector<18x16xf32>,
    %c1_118 = arith.constant 1 : index
    %c0_119 = arith.constant 0 : index
    %153 = vector.load %arg16[%c1_118, %c0_119] : memref<18x16xf32, #tpu.memory_space<vmem>>, vector<16x16xf32>
    tpu.vector_store %arg16[%c1_118, %c0_119], %147 {strides = array<i32>} : memref<18x16xf32, #tpu.memory_space<vmem>>, vector<16x16xf32>,
    %cst_120 = arith.constant 0.000000e+00 : f32
    %154 = vector.broadcast %cst_120 : f32 to vector<16x4xf32>
    %c0_121 = arith.constant 0 : index
    %c0_122 = arith.constant 0 : index
    %155 = vector.load %arg16[%c0_121, %c0_122] : memref<18x16xf32, #tpu.memory_space<vmem>>, vector<16x16xf32>
    %c0_123 = arith.constant 0 : index
    %c0_124 = arith.constant 0 : index
    %c0_125 = arith.constant 0 : index
    %156 = vector.load %arg8[%c0_123, %c0_124, %c0_125] : memref<3x16x4xbf16, #tpu.memory_space<vmem>>, vector<1x16x4xbf16>
    %157 = vector.shape_cast %156 : vector<1x16x4xbf16> to vector<16x4xbf16>
    %158 = arith.truncf %155 : vector<16x16xf32> to vector<16x16xbf16>
    %cst_126 = arith.constant dense<0.000000e+00> : vector<16x4xf32>
    %159 = tpu.matmul %158, %157, %cst_126 {dimension_numbers = #tpu.dot_dimension_numbers<[1], [0], [0], [1], [0, 0, 1, 1], [], []>} : vector<16x16xbf16>, vector<16x4xbf16>, vector<16x4xf32> -> vector<16x4xf32>
    %160 = arith.addf %154, %159 : vector<16x4xf32>
    %c1_127 = arith.constant 1 : index
    %c0_128 = arith.constant 0 : index
    %161 = vector.load %arg16[%c1_127, %c0_128] : memref<18x16xf32, #tpu.memory_space<vmem>>, vector<16x16xf32>
    %c1_129 = arith.constant 1 : index
    %c0_130 = arith.constant 0 : index
    %c0_131 = arith.constant 0 : index
    %162 = vector.load %arg8[%c1_129, %c0_130, %c0_131] : memref<3x16x4xbf16, #tpu.memory_space<vmem>>, vector<1x16x4xbf16>
    %163 = vector.shape_cast %162 : vector<1x16x4xbf16> to vector<16x4xbf16>
    %164 = arith.truncf %161 : vector<16x16xf32> to vector<16x16xbf16>
    %cst_132 = arith.constant dense<0.000000e+00> : vector<16x4xf32>
    %165 = tpu.matmul %164, %163, %cst_132 {dimension_numbers = #tpu.dot_dimension_numbers<[1], [0], [0], [1], [0, 0, 1, 1], [], []>} : vector<16x16xbf16>, vector<16x4xbf16>, vector<16x4xf32> -> vector<16x4xf32>
    %166 = arith.addf %160, %165 : vector<16x4xf32>
    %c2_133 = arith.constant 2 : index
    %c0_134 = arith.constant 0 : index
    %167 = vector.load %arg16[%c2_133, %c0_134] : memref<18x16xf32, #tpu.memory_space<vmem>>, vector<16x16xf32>
    %c2_135 = arith.constant 2 : index
    %c0_136 = arith.constant 0 : index
    %c0_137 = arith.constant 0 : index
    %168 = vector.load %arg8[%c2_135, %c0_136, %c0_137] : memref<3x16x4xbf16, #tpu.memory_space<vmem>>, vector<1x16x4xbf16>
    %169 = vector.shape_cast %168 : vector<1x16x4xbf16> to vector<16x4xbf16>
    %170 = arith.truncf %167 : vector<16x16xf32> to vector<16x16xbf16>
    %cst_138 = arith.constant dense<0.000000e+00> : vector<16x4xf32>
    %171 = tpu.matmul %170, %169, %cst_138 {dimension_numbers = #tpu.dot_dimension_numbers<[1], [0], [0], [1], [0, 0, 1, 1], [], []>} : vector<16x16xbf16>, vector<16x4xbf16>, vector<16x4xf32> -> vector<16x4xf32>
    %172 = arith.addf %166, %171 : vector<16x4xf32>
    %c0_139 = arith.constant 0 : index
    %c0_140 = arith.constant 0 : index
    %173 = vector.load %arg9[%c0_139, %c0_140] : memref<1x4xf32, #tpu.memory_space<vmem>>, vector<1x4xf32>
    %174 = vector.broadcast %173 : vector<1x4xf32> to vector<16x4xf32>
    %175 = arith.addf %172, %174 : vector<16x4xf32>
    %c0_141 = arith.constant 0 : index
    %c0_142 = arith.constant 0 : index
    %c0_143 = arith.constant 0 : index
    %176 = vector.load %arg13[%c0_141, %c0_142, %c0_143] : memref<1x16x4xf32, #tpu.memory_space<vmem>>, vector<1x16x4xf32>
    %177 = vector.shape_cast %176 : vector<1x16x4xf32> to vector<16x4xf32>
    %178 = vector.shape_cast %175 : vector<16x4xf32> to vector<1x16x4xf32>
    tpu.vector_store %arg13[%c0_141, %c0_142, %c0_143], %178 {strides = array<i32>} : memref<1x16x4xf32, #tpu.memory_space<vmem>>, vector<1x16x4xf32>,
    return
  }
  func.func @transform_0(%arg0: i32) -> (i32, i32, i32) {
    %c0_i32 = arith.constant 0 : i32
    %c0_i32_0 = arith.constant 0 : i32
    %c0_i32_1 = arith.constant 0 : i32
    return %arg0, %c0_i32, %c0_i32_0 : i32, i32, i32
  }
  func.func @transform_1(%arg0: i32) -> (i32, i32, i32) {
    %c0_i32 = arith.constant 0 : i32
    %c0_i32_0 = arith.constant 0 : i32
    %c0_i32_1 = arith.constant 0 : i32
    %c0_i32_2 = arith.constant 0 : i32
    return %c0_i32, %c0_i32_0, %c0_i32_1 : i32, i32, i32
  }
  func.func @transform_2(%arg0: i32) -> (i32, i32) {
    %c0_i32 = arith.constant 0 : i32
    %c0_i32_0 = arith.constant 0 : i32
    %c0_i32_1 = arith.constant 0 : i32
    return %c0_i32, %c0_i32_0 : i32, i32
  }
  func.func @transform_3(%arg0: i32) -> (i32, i32, i32) {
    %c0_i32 = arith.constant 0 : i32
    %c0_i32_0 = arith.constant 0 : i32
    %c0_i32_1 = arith.constant 0 : i32
    %c0_i32_2 = arith.constant 0 : i32
    return %c0_i32, %c0_i32_0, %c0_i32_1 : i32, i32, i32
  }
  func.func @transform_4(%arg0: i32) -> (i32, i32) {
    %c0_i32 = arith.constant 0 : i32
    %c0_i32_0 = arith.constant 0 : i32
    %c0_i32_1 = arith.constant 0 : i32
    return %c0_i32, %c0_i32_0 : i32, i32
  }
  func.func @transform_5(%arg0: i32) -> (i32, i32, i32) {
    %c0_i32 = arith.constant 0 : i32
    %c0_i32_0 = arith.constant 0 : i32
    %c0_i32_1 = arith.constant 0 : i32
    %c0_i32_2 = arith.constant 0 : i32
    return %c0_i32, %c0_i32_0, %c0_i32_1 : i32, i32, i32
  }
  func.func @transform_6(%arg0: i32) -> (i32, i32) {
    %c0_i32 = arith.constant 0 : i32
    %c0_i32_0 = arith.constant 0 : i32
    %c0_i32_1 = arith.constant 0 : i32
    return %c0_i32, %c0_i32_0 : i32, i32
  }
  func.func @transform_7(%arg0: i32) -> (i32, i32, i32) {
    %c0_i32 = arith.constant 0 : i32
    %c0_i32_0 = arith.constant 0 : i32
    %c0_i32_1 = arith.constant 0 : i32
    %c0_i32_2 = arith.constant 0 : i32
    return %c0_i32, %c0_i32_0, %c0_i32_1 : i32, i32, i32
  }
  func.func @transform_8(%arg0: i32) -> (i32, i32) {
    %c0_i32 = arith.constant 0 : i32
    %c0_i32_0 = arith.constant 0 : i32
    %c0_i32_1 = arith.constant 0 : i32
    return %c0_i32, %c0_i32_0 : i32, i32
  }
  func.func @transform_9(%arg0: i32) -> (i32, i32, i32) {
    %c0_i32 = arith.constant 0 : i32
    %c0_i32_0 = arith.constant 0 : i32
    %c0_i32_1 = arith.constant 0 : i32
    return %arg0, %c0_i32, %c0_i32_0 : i32, i32, i32
  }
  func.func @transform_10(%arg0: i32) -> (i32, i32, i32) {
    %c0_i32 = arith.constant 0 : i32
    %c0_i32_0 = arith.constant 0 : i32
    %c0_i32_1 = arith.constant 0 : i32
    return %arg0, %c0_i32, %c0_i32_0 : i32, i32, i32
  }
  func.func @transform_11(%arg0: i32) -> (i32, i32, i32) {
    %c0_i32 = arith.constant 0 : i32
    %c0_i32_0 = arith.constant 0 : i32
    %c0_i32_1 = arith.constant 0 : i32
    return %arg0, %c0_i32, %c0_i32_0 : i32, i32, i32
  }
  func.func @transform_12(%arg0: i32) -> (i32, i32, i32) {
    %c0_i32 = arith.constant 0 : i32
    %c0_i32_0 = arith.constant 0 : i32
    %c0_i32_1 = arith.constant 0 : i32
    return %arg0, %c0_i32, %c0_i32_0 : i32, i32, i32
  }
}

</mosaic_0001>

<bundles_post_ra>
// kernel: fwd.1
= control target key start
LH: loop header
LB: loop body
LE: loop exit
PB: predicated region body
PF: predicated region fallthrough
CT: control target
= control target key end

     0   :  { %s2367_s21 = smov 0   ;;  %s2666_s0 = inlined_call_operand.vmem [shape: f32[2,68,1], index: 0, kind: input, shape index: {}]   ;;  %s2667_s1 = inlined_call_operand.vmem [shape: bf16[5,1,8], index: 1, kind: input, shape index: {}]   ;;  %s2668_s2 = inlined_call_operand.vmem [shape: f32[1,8], index: 2, kind: input, shape index: {}]   ;;  %s2669_s3 = inlined_call_operand.vmem [shape: bf16[5,8,16], index: 3, kind: input, shape index: {}]   ;;  %s2670_s4 = inlined_call_operand.vmem [shape: f32[1,16], index: 4, kind: input, shape index: {}]   ;;  %s2671_s5 = inlined_call_operand.vmem [shape: bf16[5,16,16], index: 5, kind: input, shape index: {}]   ;;  %s2672_s6 = inlined_call_operand.vmem [shape: f32[1,16], index: 6, kind: input, shape index: {}]   ;;  %s2673_s7 = inlined_call_operand.vmem [shape: bf16[3,16,4], index: 7, kind: input, shape index: {}]   ;;  %s2674_s8 = inlined_call_operand.vmem [shape: f32[1,4], index: 8, kind: input, shape index: {}]   ;;  %s2675_s9 = inlined_call_operand.vmem [shape: f32[2,64,8], index: 9, kind: output, shape index: {0}]   ;;  %s2676_s10 = inlined_call_operand.vmem [shape: f32[2,32,16], index: 10, kind: output, shape index: {1}]   ;;  %s2677_s11 = inlined_call_operand.vmem [shape: f32[2,16,16], index: 11, kind: output, shape index: {2}]   ;;  %s2678_s12 = inlined_call_operand.vmem [shape: f32[2,16,4], index: 12, kind: output, shape index: {3}]  }
   0x1 LB: > { %s1969_s22 = sadd.s32 4294967295, %s2297_s21   ;;  %p1973_p0 = scmp.ge.s32.totalorder %s2297_s21, 1  ;;  %s2297_s21 = sphi %s2367_s21, %s23_s21  }
   0x2   : > { %p369_p1 = scmp.lt.s32.totalorder %s2297_s21, 3 }
   0x4   : > { %p370_p2 = pnand %p1973_p0, %p369_p1 }
   0x5   : > { %p426_p3 = scmp.lt.s32.totalorder (!%p370_p2), %s1969_s22, 1  ;;  %v2299_v0 = vmov (!%p370_p2), 0   ;;  %vm897_vm0 = vcmask (!%p370_p2), 64512   ;;  %v2300_v61 = vmov (!%p370_p2), 0.0   ;;  %vm914_vm1 = vcmask (!%p370_p2), 60416  }
   0x6   : > { %373 = sbr.rel (%p370_p2) target bundleno = 979 (0x3d3), region = 56  ;;  %2192 = vset.pattern.permute.xlu1 (!%p370_p2), %v2299_v0  ;;  %2181 = vset.pattern.permute.xlu0 (!%p370_p2), %v2299_v0  ;;  %908 = vst.msk [vmem:[#allocation2 + $0x10] sm:$0xff] (!%p370_p2), %vm897_vm0, %v2300_v61  ;;  %909 = vst.msk [vmem:[#allocation2 + $0x18] sm:$0xff] (!%p370_p2), %vm897_vm0, %v2300_v61  ;;  %v1988_v62 = vld [vmem:[%s2669_s3 + $0x4] sm:$0xf] (!%p370_p2)  ;;  %vm952_vm2 = vcmask (!%p370_p2), 1043456  }
   0x7   : > { %910 = vst.msk [vmem:[#allocation2 + $0x20] sm:$0xff] (!%p370_p2), %vm897_vm0, %v2300_v61  ;;  %906 = vst.msk [vmem:[#allocation2] sm:$0xff] (!%p370_p2), %vm897_vm0, %v2300_v61  ;;  %2100 = vmatprep.subr.bf16.mxu1 (!%p370_p2), %v2300_v61  ;;  %2164 = vmatprep.subr.msk.bf16.mxu0 (!%p370_p2), %vm952_vm2, %v1988_v62  ;;  %v954_v63 = vsel (!%p370_p2), %vm952_vm2, %v1988_v62, 0  ;;  %v2449_v0 = vld [vmem:[%s2669_s3] sm:$0xf] (!%p370_p2)  ;;  %vm1304_vm3 = vcmask (!%p370_p2), 130048  }
   0x8   : > { %907 = vst.msk [vmem:[#allocation2 + $0x8] sm:$0xff] (!%p370_p2), %vm897_vm0, %v2300_v61  ;;  %911 = vst.msk [vmem:[#allocation2 + $0x28] sm:$0xff] (!%p370_p2), %vm897_vm0, %v2300_v61  ;;  %2071 = vmatpush3.bf16.msra.mxu0 (!%p370_p2), %v954_v63  ;;  %vm1313_vm4 = vcmask (!%p370_p2), 125952   ;;  %vm2301_vm5 = vmmov (!%p370_p2), 0   ;;  %vm1630_vm6 = vcmask (!%p370_p2), 123904   ;;  %vm1812_vm7 = vcmask (!%p370_p2), 31744  }
   0x9   : > { %912 = vst.msk [vmem:[#allocation2 + $0x30] sm:$0xff] (!%p370_p2), %vm897_vm0, %v2300_v61  ;;  %913 = vst.msk [vmem:[#allocation2 + $0x38] sm:$0xff] (!%p370_p2), %vm897_vm0, %v2300_v61  ;;  %2165 = vmatprep.subr.msk.bf16.mxu0 (!%p370_p2), %vm952_vm2, %v2449_v0  ;;  %2102 = vmatprep.mubr.msk.bf16.mxu1 (!%p370_p2), %vm2301_vm5, %v2300_v61 }
   0xa   : > { %915 = vst.msk [vmem:[#allocation2 + $0x40] sm:$0xf] (!%p370_p2), %vm914_vm1, %v2300_v61 }
   0xb   : > { %1311 = vst.msk [vmem:[#allocation3 + $0x10] sm:$0xff] (!%p370_p2), %vm1304_vm3, %v2300_v61  ;;  %1312 = vst.msk [vmem:[#allocation3 + $0x18] sm:$0xff] (!%p370_p2), %vm1304_vm3, %v2300_v61 }
   0xc   : > { %1309 = vst.msk [vmem:[#allocation3] sm:$0xff] (!%p370_p2), %vm1304_vm3, %v2300_v61  ;;  %1310 = vst.msk [vmem:[#allocation3 + $0x8] sm:$0xff] (!%p370_p2), %vm1304_vm3, %v2300_v61 }
   0xd   : > { %s2680_s22 = smov (!%p426_p3, %s1969_s22), 1  ;;  %1628 = vst.msk [vmem:[#allocation4] sm:$0xff] %vm1304_vm3, %v2300_v61  ;;  %1629 = vst.msk [vmem:[#allocation4 + $0x8] sm:$0xff] %vm1304_vm3, %v2300_v61 }
   0xe   : > { %s2169_s23 = smul.u32 72, %s2680_s22  ;;  %s2035_s27 = sshll.u32 %s2680_s22, 6  ;;  %1314 = vst.msk [vmem:[#allocation3 + $0x20] sm:$0xf] %vm1313_vm4, %v2300_v61 }
   0xf   : > { %s2505_s30 = scalar_lea.vmem %s2675_s9, %s2035_s27  ;;  %s2036_s25 = sshll.u32 %s2680_s22, 5  ;;  %1631 = vst.msk [vmem:[#allocation4 + $0x10] sm:$0x3] %vm1630_vm6, %v2300_v61 }
  0x10   : > { %s2381_s26 = scalar_lea.vmem %s2666_s0, %s2169_s23  ;;  %s440_s28 = scalar_lea.vmem %s2676_s10, %s2036_s25 }
  0x11   : > { %v534_v1 = vld [vmem:[%s2381_s26 + $0x1] sm:$0xff]  ;;  %v535_v2 = vld [vmem:[%s2381_s26 + $0x9] sm:$0xff]  ;;  %v536_v5 = vld [vmem:[%s2381_s26 + $0x11] sm:$0xff]  ;;  %s2037_s27 = sshll.u32 %s2680_s22, 4 }
  0x12   : > { %v452_v3 = vld [vmem:[%s2381_s26] sm:$0xff]  ;;  %v453_v4 = vld [vmem:[%s2381_s26 + $0x8] sm:$0xff]  ;;  %v454_v7 = vld [vmem:[%s2381_s26 + $0x10] sm:$0xff]  ;;  %v2193_v15 = vpack.i.bf16 %v535_v2, %v534_v1  ;;  %v514_v1 = vlaneseq  ;;  %s450_s19 = scalar_lea.vmem %s2678_s12, %s2037_s27 }
  0x13   : > { %v537_v6 = vld [vmem:[%s2381_s26 + $0x19] sm:$0xff]  ;;  %v458_v9 = vld [vmem:[%s2381_s26 + $0x30] sm:$0xff]  ;;  %v457_v12 = vld [vmem:[%s2381_s26 + $0x28] sm:$0xff]  ;;  %v2182_v18 = vpack.i.bf16 %v453_v4, %v452_v3 }
  0x14   : > { %v455_v8 = vld [vmem:[%s2381_s26 + $0x18] sm:$0xff]  ;;  %v456_v11 = vld [vmem:[%s2381_s26 + $0x20] sm:$0xff]  ;;  %v539_v17 = vld [vmem:[%s2381_s26 + $0x29] sm:$0xff]  ;;  %2194 = vperm.xlu1 %2192, %v2193_v15   ;;  %v2198_v19 = vpack.i.bf16 %v537_v6, %v536_v5  ;;  %v515_v3 = vshrl.u32 %v514_v1, 7 }
  0x15   : > { %v459_v10 = vld [vmem:[%s2381_s26 + $0x38] sm:$0xff]  ;;  %v538_v16 = vld [vmem:[%s2381_s26 + $0x21] sm:$0xff]  ;;  %2183 = vperm.xlu0 %2181, %v2182_v18   ;;  %v2187_v20 = vpack.i.bf16 %v455_v8, %v454_v7  ;;  %v618_v24 = vld [vmem:[%s2381_s26 + $0xa] sm:$0xff]  ;;  %v2203_v26 = vpack.i.bf16 %v457_v12, %v456_v11 }
  0x16   : > { %v540_v13 = vld [vmem:[%s2381_s26 + $0x31] sm:$0xff]  ;;  %v541_v14 = vld [vmem:[%s2381_s26 + $0x39] sm:$0xff]  ;;  %v617_v23 = vld [vmem:[%s2381_s26 + $0x2] sm:$0xff]  ;;  %v2208_v25 = vpack.i.bf16 %v459_v10, %v458_v9  ;;  %v2213_v32 = vpack.i.bf16 %v539_v17, %v538_v16  ;;  %v516_v8 = vsub.s32 0, %v515_v3 }
  0x17   : > { %v619_v21 = vld [vmem:[%s2381_s26 + $0x12] sm:$0xff]  ;;  %v620_v22 = vld [vmem:[%s2381_s26 + $0x1a] sm:$0xff]  ;;  %v621_v29 = vld [vmem:[%s2381_s26 + $0x22] sm:$0xff]  ;;  %v2218_v31 = vpack.i.bf16 %v541_v14, %v540_v13  ;;  %v2223_v38 = vpack.i.bf16 %v618_v24, %v617_v23 }
  0x18   : > { %2199 = vperm.xlu1 %2192, %v2198_v19   ;;  %v623_v27 = vld [vmem:[%s2381_s26 + $0x32] sm:$0xff]  ;;  %v624_v28 = vld [vmem:[%s2381_s26 + $0x3a] sm:$0xff]  ;;  %v622_v30 = vld [vmem:[%s2381_s26 + $0x2a] sm:$0xff]  ;;  %v2228_v37 = vpack.i.bf16 %v620_v22, %v619_v21 }
  0x19   : > { %2188 = vperm.xlu0 %2181, %v2187_v20   ;;  %v702_v33 = vld [vmem:[%s2381_s26 + $0x13] sm:$0xff]  ;;  %v703_v34 = vld [vmem:[%s2381_s26 + $0x1b] sm:$0xff]  ;;  %v700_v35 = vld [vmem:[%s2381_s26 + $0x3] sm:$0xff]  ;;  %v2238_v43 = vpack.i.bf16 %v624_v28, %v623_v27  ;;  %v2233_v44 = vpack.i.bf16 %v622_v30, %v621_v29 }
  0x1a   : > { %v701_v36 = vld [vmem:[%s2381_s26 + $0xb] sm:$0xff]  ;;  %v706_v39 = vld [vmem:[%s2381_s26 + $0x33] sm:$0xff]  ;;  %v707_v40 = vld [vmem:[%s2381_s26 + $0x3b] sm:$0xff]  ;;  %v2248_v49 = vpack.i.bf16 %v703_v34, %v702_v33 }
  0x1b   : > { %v704_v41 = vld [vmem:[%s2381_s26 + $0x23] sm:$0xff]  ;;  %v705_v42 = vld [vmem:[%s2381_s26 + $0x2b] sm:$0xff]  ;;  %v785_v45 = vld [vmem:[%s2381_s26 + $0x14] sm:$0xff]  ;;  %v2243_v50 = vpack.i.bf16 %v701_v36, %v700_v35  ;;  %v2258_v55 = vpack.i.bf16 %v707_v40, %v706_v39 }
  0x1c   : > { %2209 = vperm.xlu1 %2192, %v2208_v25   ;;  %v786_v46 = vld [vmem:[%s2381_s26 + $0x1c] sm:$0xff]  ;;  %v783_v47 = vld [vmem:[%s2381_s26 + $0x4] sm:$0xff]  ;;  %v784_v48 = vld [vmem:[%s2381_s26 + $0xc] sm:$0xff]  ;;  %v2253_v56 = vpack.i.bf16 %v705_v42, %v704_v41 }
  0x1d   : > { %2204 = vperm.xlu0 %2181, %v2203_v26   ;;  %v789_v51 = vld [vmem:[%s2381_s26 + $0x34] sm:$0xff]  ;;  %v790_v52 = vld [vmem:[%s2381_s26 + $0x3c] sm:$0xff]  ;;  %v787_v53 = vld [vmem:[%s2381_s26 + $0x24] sm:$0xff]  ;;  %v2268_v57 = vpack.i.bf16 %v786_v46, %v785_v45  ;;  %v2263_v58 = vpack.i.bf16 %v784_v48, %v783_v47 }
  0x1e   : > { %v788_v54 = vld [vmem:[%s2381_s26 + $0x2c] sm:$0xff]  ;;  %v2278_v59 = vpack.i.bf16 %v790_v52, %v789_v51  ;;  %v1983_v5 = vld [vmem:[%s2667_s1 + $0x1] sm:$0x1]  ;;  %v460_v6 = vld [vmem:[%s2667_s1] sm:$0x1] }
  0x1f   : > { %v2273_v60 = vpack.i.bf16 %v788_v54, %v787_v53  ;;  %v556_v9 = vunpack.c.l.bf16 %v1983_v5  ;;  %v473_v11 = vunpack.c.l.bf16 %v460_v6  ;;  %v1984_v12 = vld [vmem:[%s2667_s1 + $0x2] sm:$0x1]  ;;  %v1985_v13 = vld [vmem:[%s2667_s1 + $0x3] sm:$0x1]  ;;  %v1986_v14 = vld [vmem:[%s2667_s1 + $0x4] sm:$0x1] }
  0x20   : > { %2219 = vperm.xlu1 %2192, %v2218_v31   ;;  %v639_v19 = vunpack.c.l.bf16 %v1984_v12  ;;  %v722_v20 = vunpack.c.l.bf16 %v1985_v13  ;;  %v805_v21 = vunpack.c.l.bf16 %v1986_v14 }
  0x21   : > { %2214 = vperm.xlu0 %2181, %v2213_v32   ;;  %v600_v16 = vrot.slane %v556_v9, %v516_v8  ;;  %v517_v18 = vrot.slane %v473_v11, %v516_v8 }
  0x22   : > { %v2468_v32 = vrot.slane %v639_v19, %v516_v8  ;;  %v2470_v33 = vrot.slane %v722_v20, %v516_v8  ;;  %v2472_v34 = vrot.slane %v805_v21, %v516_v8 }
  0x24   : > { %2229 = vperm.xlu1 %2192, %v2228_v37  }
  0x25   : > { %2224 = vperm.xlu0 %2181, %v2223_v38  }
  0x28   : > { %2239 = vperm.xlu1 %2192, %v2238_v43  }
  0x29   : > { %2234 = vperm.xlu0 %2181, %v2233_v44  }
  0x2c   : > { %2249 = vperm.xlu1 %2192, %v2248_v49  }
  0x2d   : > { %2244 = vperm.xlu0 %2181, %v2243_v50  }
  0x30   : > { %2259 = vperm.xlu1 %2192, %v2258_v55  }
  0x31   : > { %2254 = vperm.xlu0 %2181, %v2253_v56  }
  0x34   : > { %2269 = vperm.xlu1 %2192, %v2268_v57  }
  0x35   : > { %2264 = vperm.xlu0 %2181, %v2263_v58  }
  0x38   : > { %2279 = vperm.xlu1 %2192, %v2278_v59  }
  0x39   : > { %2274 = vperm.xlu0 %2181, %v2273_v60  }
  0x93   : > { %v2195_v2 = vpop.permute.xlu1 %2194 }
  0x94   : > { %v2184_v4 = vpop.permute.xlu0 %2183  ;;  %v2197_v22 = vunpack.i.h.bf16 %v2195_v2  ;;  %v2196_v23 = vunpack.i.l.bf16 %v2195_v2 }
  0x95   : > { %v2186_v24 = vunpack.i.h.bf16 %v2184_v4  ;;  %v2185_v25 = vunpack.i.l.bf16 %v2184_v4 }
  0x96   : > { %v602_v35 = vmul.f32 %v2197_v22, %v600_v16  ;;  %v601_v36 = vmul.f32 %v2196_v23, %v600_v16 }
  0x97   : > { %v2200_v7 = vpop.permute.xlu1 %2199  ;;  %v519_v37 = vmul.f32 %v2186_v24, %v517_v18  ;;  %v518_v38 = vmul.f32 %v2185_v25, %v517_v18 }
  0x98   : > { %v2189_v10 = vpop.permute.xlu0 %2188  ;;  %v2202_v26 = vunpack.i.h.bf16 %v2200_v7  ;;  %v2201_v27 = vunpack.i.l.bf16 %v2200_v7 }
  0x99   : > { %v2191_v28 = vunpack.i.h.bf16 %v2189_v10  ;;  %v2190_v29 = vunpack.i.l.bf16 %v2189_v10  ;;  %v610_v53 = vadd.f32 %v602_v35, %v519_v37  ;;  %v609_v54 = vadd.f32 %v601_v36, %v518_v38 }
  0x9a   : > { %v604_v39 = vmul.f32 %v2202_v26, %v600_v16  ;;  %v603_v40 = vmul.f32 %v2201_v27, %v600_v16 }
  0x9b   : > { %v2210_v15 = vpop.permute.xlu1 %2209  ;;  %v521_v41 = vmul.f32 %v2191_v28, %v517_v18  ;;  %v520_v42 = vmul.f32 %v2190_v29, %v517_v18 }
  0x9c   : > { %v2205_v17 = vpop.permute.xlu0 %2204  ;;  %v2212_v44 = vunpack.i.h.bf16 %v2210_v15  ;;  %v2211_v45 = vunpack.i.l.bf16 %v2210_v15 }
  0x9d   : > { %v2207_v49 = vunpack.i.h.bf16 %v2205_v17  ;;  %v2206_v50 = vunpack.i.l.bf16 %v2205_v17  ;;  %v612_v57 = vadd.f32 %v604_v39, %v521_v41  ;;  %v611_v58 = vadd.f32 %v603_v40, %v520_v42 }
  0x9e   : > { %v525_v63 = vmul.f32 %v2212_v44, %v517_v18  ;;  %v524_v1 = vmul.f32 %v2211_v45, %v517_v18 }
  0x9f   : > { %v2220_v30 = vpop.permute.xlu1 %2219  ;;  %v523_v5 = vmul.f32 %v2207_v49, %v517_v18  ;;  %v522_v6 = vmul.f32 %v2206_v50, %v517_v18 }
  0xa0   : > { %v2215_v31 = vpop.permute.xlu0 %2214  ;;  %v2222_v46 = vunpack.i.h.bf16 %v2220_v30  ;;  %v2221_v47 = vunpack.i.l.bf16 %v2220_v30 }
  0xa1   : > { %v2217_v51 = vunpack.i.h.bf16 %v2215_v31  ;;  %v2216_v52 = vunpack.i.l.bf16 %v2215_v31 }
  0xa2   : > { %v608_v2 = vmul.f32 %v2222_v46, %v600_v16  ;;  %v607_v3 = vmul.f32 %v2221_v47, %v600_v16 }
  0xa3   : > { %v2230_v43 = vpop.permute.xlu1 %2229  ;;  %v606_v7 = vmul.f32 %v2217_v51, %v600_v16  ;;  %v605_v8 = vmul.f32 %v2216_v52, %v600_v16 }
  0xa4   : > { %v2225_v48 = vpop.permute.xlu0 %2224  ;;  %v2232_v55 = vunpack.i.h.bf16 %v2230_v43  ;;  %v2231_v56 = vunpack.i.l.bf16 %v2230_v43  ;;  %v615_v20 = vadd.f32 %v607_v3, %v524_v1  ;;  %v616_v21 = vadd.f32 %v608_v2, %v525_v63 }
  0xa5   : > { %v2227_v59 = vunpack.i.h.bf16 %v2225_v48  ;;  %v2226_v60 = vunpack.i.l.bf16 %v2225_v48  ;;  %v613_v24 = vadd.f32 %v605_v8, %v522_v6  ;;  %v614_v16 = vadd.f32 %v606_v7, %v523_v5 }
  0xa6   : > { %v687_v9 = vmul.f32 %v2232_v55, %v2468_v32  ;;  %v686_v10 = vmul.f32 %v2231_v56, %v2468_v32 }
  0xa7   : > { %v2240_v62 = vpop.permute.xlu1 %2239  ;;  %v685_v13 = vmul.f32 %v2227_v59, %v2468_v32  ;;  %v684_v14 = vmul.f32 %v2226_v60, %v2468_v32 }
  0xa8   : > { %v2235_v4 = vpop.permute.xlu0 %2234  ;;  %v2242_v11 = vunpack.i.h.bf16 %v2240_v62  ;;  %v2241_v12 = vunpack.i.l.bf16 %v2240_v62  ;;  %v694_v27 = vadd.f32 %v686_v10, %v611_v58  ;;  %v695_v28 = vadd.f32 %v687_v9, %v612_v57 }
  0xa9   : > { %v2237_v15 = vunpack.i.h.bf16 %v2235_v4  ;;  %v2236_v17 = vunpack.i.l.bf16 %v2235_v4  ;;  %v692_v31 = vadd.f32 %v684_v14, %v609_v54  ;;  %v693_v35 = vadd.f32 %v685_v13, %v610_v53 }
  0xaa   : > { %v691_v29 = vmul.f32 %v2242_v11, %v2468_v32  ;;  %v690_v30 = vmul.f32 %v2241_v12, %v2468_v32 }
  0xab   : > { %v2250_v19 = vpop.permute.xlu1 %2249  ;;  %v689_v36 = vmul.f32 %v2237_v15, %v2468_v32  ;;  %v688_v37 = vmul.f32 %v2236_v17, %v2468_v32 }
  0xac   : > { %v2252_v22 = vunpack.i.h.bf16 %v2250_v19  ;;  %v2251_v23 = vunpack.i.l.bf16 %v2250_v19  ;;  %v2245_v18 = vpop.permute.xlu0 %2244  ;;  %v698_v48 = vadd.f32 %v690_v30, %v615_v20  ;;  %v699_v49 = vadd.f32 %v691_v29, %v616_v21 }
  0xad   : > { %v2247_v25 = vunpack.i.h.bf16 %v2245_v18  ;;  %v2246_v26 = vunpack.i.l.bf16 %v2245_v18  ;;  %v696_v51 = vadd.f32 %v688_v37, %v613_v24  ;;  %v697_v52 = vadd.f32 %v689_v36, %v614_v16 }
  0xae   : > { %v770_v39 = vmul.f32 %v2252_v22, %v2470_v33  ;;  %v769_v40 = vmul.f32 %v2251_v23, %v2470_v33 }
  0xaf   : > { %v2260_v38 = vpop.permute.xlu1 %2259  ;;  %v768_v44 = vmul.f32 %v2247_v25, %v2470_v33  ;;  %v767_v45 = vmul.f32 %v2246_v26, %v2470_v33 }
  0xb0   : > { %v2262_v41 = vunpack.i.h.bf16 %v2260_v38  ;;  %v2261_v42 = vunpack.i.l.bf16 %v2260_v38  ;;  %v2255_v43 = vpop.permute.xlu0 %2254  ;;  %v777_v56 = vadd.f32 %v769_v40, %v694_v27  ;;  %v778_v57 = vadd.f32 %v770_v39, %v695_v28 }
  0xb1   : > { %v2257_v46 = vunpack.i.h.bf16 %v2255_v43  ;;  %v2256_v47 = vunpack.i.l.bf16 %v2255_v43  ;;  %v775_v62 = vadd.f32 %v767_v45, %v692_v31  ;;  %v776_v63 = vadd.f32 %v768_v44, %v693_v35 }
  0xb2   : > { %v774_v50 = vmul.f32 %v2262_v41, %v2470_v33  ;;  %v773_v32 = vmul.f32 %v2261_v42, %v2470_v33 }
  0xb3   : > { %v772_v53 = vmul.f32 %v2257_v46, %v2470_v33  ;;  %v771_v54 = vmul.f32 %v2256_v47, %v2470_v33  ;;  %v2270_v55 = vpop.permute.xlu1 %2269  ;;  %v1987_v33 = vld [vmem:[%s2668_s2] ss:$0 sm:$0xff] }
  0xb4   : > { %v2272_v58 = vunpack.i.h.bf16 %v2270_v55  ;;  %v2271_v59 = vunpack.i.l.bf16 %v2270_v55  ;;  %v2265_v60 = vpop.permute.xlu0 %2264  ;;  %v781_v3 = vadd.f32 %v773_v32, %v698_v48  ;;  %v782_v4 = vadd.f32 %v774_v50, %v699_v49 }
  0xb5   : > { %v2267_v1 = vunpack.i.h.bf16 %v2265_v60  ;;  %v2266_v2 = vunpack.i.l.bf16 %v2265_v60  ;;  %v779_v7 = vadd.f32 %v771_v54, %v696_v51  ;;  %v780_v8 = vadd.f32 %v772_v53, %v697_v52 }
  0xb6   : > { %v853_v5 = vmul.f32 %v2272_v58, %v2472_v34  ;;  %v852_v6 = vmul.f32 %v2271_v59, %v2472_v34 }
  0xb7   : > { %v851_v9 = vmul.f32 %v2267_v1, %v2472_v34  ;;  %v850_v10 = vmul.f32 %v2266_v2, %v2472_v34  ;;  %v2280_v11 = vpop.permute.xlu1 %2279  ;;  %v1993_v2 = vld [vmem:[%s2669_s3 + $0x8] sm:$0xf] }
  0xb8   : > { %v860_v12 = vadd.f32 %v852_v6, %v777_v56  ;;  %v861_v13 = vadd.f32 %v853_v5, %v778_v57  ;;  %v2282_v14 = vunpack.i.h.bf16 %v2280_v11  ;;  %v2281_v15 = vunpack.i.l.bf16 %v2280_v11  ;;  %v2275_v17 = vpop.permute.xlu0 %2274 }
  0xb9   : > { %v858_v19 = vadd.f32 %v850_v10, %v775_v62  ;;  %v859_v20 = vadd.f32 %v851_v9, %v776_v63  ;;  %v2277_v21 = vunpack.i.h.bf16 %v2275_v17  ;;  %v2276_v22 = vunpack.i.l.bf16 %v2275_v17  ;;  %v1999_v17 = vld [vmem:[%s2669_s3 + $0x10] sm:$0xf] }
  0xba   : > { %v875_v23 = vadd.f32 %v1987_v33, %v860_v12  ;;  %v876_v18 = vadd.f32 %v1987_v33, %v861_v13  ;;  %v857_v24 = vmul.f32 %v2282_v14, %v2472_v34  ;;  %v856_v16 = vmul.f32 %v2281_v15, %v2472_v34 }
  0xbb   : > { %v873_v25 = vadd.f32 %v1987_v33, %v858_v19  ;;  %v874_v26 = vadd.f32 %v1987_v33, %v859_v20  ;;  %v855_v27 = vmul.f32 %v2277_v21, %v2472_v34  ;;  %v854_v28 = vmul.f32 %v2276_v22, %v2472_v34 }
  0xbc   : > { %v883_v29 = vmul.f32 0.1, %v875_v23  ;;  %v884_v30 = vmul.f32 0.1, %v876_v18  ;;  %v864_v31 = vadd.f32 %v856_v16, %v781_v3  ;;  %v865_v35 = vadd.f32 %v857_v24, %v782_v4 }
  0xbd   : > { %v881_v36 = vmul.f32 0.1, %v873_v25  ;;  %v882_v37 = vmul.f32 0.1, %v874_v26  ;;  %v862_v38 = vadd.f32 %v854_v28, %v779_v7  ;;  %v863_v39 = vadd.f32 %v855_v27, %v780_v8  ;;  %v2283_v27 = vld [vmem:[%s2671_s5 + $0x8] sm:$0xff]  }
  0xbe   : > { %v891_v40 = vmax.f32 %v875_v23, %v883_v29  ;;  %v892_v41 = vmax.f32 %v876_v18, %v884_v30  ;;  %v879_v34 = vadd.f32 %v1987_v33, %v864_v31  ;;  %v880_v42 = vadd.f32 %v1987_v33, %v865_v35  ;;  %2101 = vmatpush3.bf16.msra.mxu1 %v2283_v27  ;;  %v2002_v28 = vld [vmem:[%s2670_s4] ss:$0 sm:$0xff] }
  0xbf   : > { %v889_v43 = vmax.f32 %v873_v25, %v881_v36  ;;  %v890_v44 = vmax.f32 %v874_v26, %v882_v37  ;;  %v877_v45 = vadd.f32 %v1987_v33, %v862_v38  ;;  %v878_v46 = vadd.f32 %v1987_v33, %v863_v39  ;;  %v1996_v33 = vld [vmem:[%s2669_s3 + $0xc] sm:$0xf]  ;;  %2106 = vmatprep.subr.bf16.mxu1 %v2300_v61 }
  0xc0   : > { %900 = vst.msk [vmem:[%s2505_s30 + $0x10] sm:$0xff] %vm897_vm0, %v891_v40  ;;  %901 = vst.msk [vmem:[%s2505_s30 + $0x18] sm:$0xff] %vm897_vm0, %v892_v41  ;;  %v887_v47 = vmul.f32 0.1, %v879_v34  ;;  %v888_v48 = vmul.f32 0.1, %v880_v42 }
  0xc1   : > { %918 = vst.msk [vmem:[#allocation2 + $0x12] sm:$0xff] %vm897_vm0, %v891_v40  ;;  %919 = vst.msk [vmem:[#allocation2 + $0x1a] sm:$0xff] %vm897_vm0, %v892_v41  ;;  %v885_v49 = vmul.f32 0.1, %v877_v45  ;;  %v886_v50 = vmul.f32 0.1, %v878_v46 }
  0xc2   : > { %898 = vst.msk [vmem:[%s2505_s30] sm:$0xff] %vm897_vm0, %v889_v43  ;;  %899 = vst.msk [vmem:[%s2505_s30 + $0x8] sm:$0xff] %vm897_vm0, %v890_v44  ;;  %v895_v32 = vmax.f32 %v879_v34, %v887_v47  ;;  %v896_v51 = vmax.f32 %v880_v42, %v888_v48  ;;  %v1012_v63 = vsel %vm952_vm2, %v2449_v0, 0  ;;  %v1082_v8 = vsel %vm952_vm2, %v1993_v2, 0 }
  0xc3   : > { %916 = vst.msk [vmem:[#allocation2 + $0x2] sm:$0xff] %vm897_vm0, %v889_v43  ;;  %917 = vst.msk [vmem:[#allocation2 + $0xa] sm:$0xff] %vm897_vm0, %v890_v44  ;;  %v893_v52 = vmax.f32 %v877_v45, %v885_v49  ;;  %v894_v53 = vmax.f32 %v878_v46, %v886_v50  ;;  %v1156_v14 = vsel %vm952_vm2, %v1996_v33, 0  ;;  %v1230_v23 = vsel %vm952_vm2, %v1999_v17, 0  ;;  %v2284_v49 = vld [vmem:[%s2671_s5] sm:$0xff]  }
  0xc4   : > { %904 = vst.msk [vmem:[%s2505_s30 + $0x30] sm:$0xff] %vm897_vm0, %v895_v32  ;;  %905 = vst.msk [vmem:[%s2505_s30 + $0x38] sm:$0xff] %vm897_vm0, %v896_v51 }
  0xc5   : > { %922 = vst.msk [vmem:[#allocation2 + $0x32] sm:$0xff] %vm897_vm0, %v895_v32  ;;  %923 = vst.msk [vmem:[#allocation2 + $0x3a] sm:$0xff] %vm897_vm0, %v896_v51 }
  0xc6   : > { %902 = vst.msk [vmem:[%s2505_s30 + $0x20] sm:$0xff] %vm897_vm0, %v893_v52  ;;  %903 = vst.msk [vmem:[%s2505_s30 + $0x28] sm:$0xff] %vm897_vm0, %v894_v53  ;;  %s445_s30 = scalar_lea.vmem %s2677_s11, %s2037_s27 }
  0xc7   : > { %920 = vst.msk [vmem:[#allocation2 + $0x22] sm:$0xff] %vm897_vm0, %v893_v52  ;;  %921 = vst.msk [vmem:[#allocation2 + $0x2a] sm:$0xff] %vm897_vm0, %v894_v53  ;;  %v2285_v52 = vld [vmem:[%s2671_s5 + $0x10] sm:$0xff]  }
  0xc8   : > { %v1066_v6 = vld [vmem:[#allocation2 + $0x12] ss:$2 sm:$0xff]  ;;  %v1140_v12 = vld [vmem:[#allocation2 + $0x13] ss:$2 sm:$0xff] }
  0xca   : > { %v935_v54 = vld [vmem:[#allocation2 + $0x1] ss:$2 sm:$0xff]  ;;  %v937_v55 = vld [vmem:[#allocation2 + $0x11] ss:$2 sm:$0xff]  ;;  %v924_v57 = vld [vmem:[#allocation2] ss:$2 sm:$0xff] }
  0xcb   : > { %v944_v56 = vpack.c.bf16 %v937_v55, %v935_v54  ;;  %v926_v58 = vld [vmem:[#allocation2 + $0x10] ss:$2 sm:$0xff]  ;;  %v1138_v11 = vld [vmem:[#allocation2 + $0x3] ss:$2 sm:$0xff] }
  0xcc   : > { %v932_v1 = vpack.c.bf16 %v926_v58, %v924_v57  ;;  %v1064_v5 = vld [vmem:[#allocation2 + $0x2] ss:$2 sm:$0xff]  ;;  %v1070_v10 = vld [vmem:[#allocation2 + $0x32] ss:$2 sm:$0xff]  ;;  %v1147_v15 = vpack.c.bf16 %v1140_v12, %v1138_v11  ;;  %v1144_v20 = vld [vmem:[#allocation2 + $0x33] ss:$2 sm:$0xff] }
  0xcd   : > { %2072 = vmatprep.mubr.msk.bf16.mxu0 %vm897_vm0, %v944_v56  ;;  %v1073_v0 = vpack.c.bf16 %v1066_v6, %v1064_v5  ;;  %v1212_v18 = vld [vmem:[#allocation2 + $0x4] ss:$2 sm:$0xff]  ;;  %v1218_v25 = vld [vmem:[#allocation2 + $0x34] ss:$2 sm:$0xff] }
  0xce   : > { %v939_v59 = vld [vmem:[#allocation2 + $0x21] ss:$2 sm:$0xff]  ;;  %v941_v60 = vld [vmem:[#allocation2 + $0x31] ss:$2 sm:$0xff]  ;;  %v928_v3 = vld [vmem:[#allocation2 + $0x20] ss:$2 sm:$0xff] }
  0xcf   : > { %v945_v62 = vpack.c.bf16 %v941_v60, %v939_v59  ;;  %v930_v4 = vld [vmem:[#allocation2 + $0x30] ss:$2 sm:$0xff]  ;;  %v1142_v19 = vld [vmem:[#allocation2 + $0x23] ss:$2 sm:$0xff] }
  0xd0   : > { %v933_v7 = vpack.c.bf16 %v930_v4, %v928_v3  ;;  %v1068_v9 = vld [vmem:[#allocation2 + $0x22] ss:$2 sm:$0xff]  ;;  %v1148_v22 = vpack.c.bf16 %v1144_v20, %v1142_v19  ;;  %v2286_v56 = vld [vmem:[%s2671_s5 + $0x18] sm:$0xff]  }
  0xd1   : > { %2073 = vmatmul.mubr.msk.bf16.vlgmr.msra.gmra.mrb[0].mxu0 %vm897_vm0, %v945_v62  ;;  %v1074_v13 = vpack.c.bf16 %v1070_v10, %v1068_v9  ;;  %v1214_v21 = vld [vmem:[#allocation2 + $0x14] ss:$2 sm:$0xff]  ;;  %v1216_v16 = vld [vmem:[#allocation2 + $0x24] ss:$2 sm:$0xff] }
  0xd2   : > { %2077 = vmatpush3.bf16.msra.mxu0 %v1012_v63  ;;  %2078 = vmatprep.mubr.msk.bf16.mxu0 %vm897_vm0, %v932_v1  ;;  %v1221_v24 = vpack.c.bf16 %v1214_v21, %v1212_v18  ;;  %v1222_v26 = vpack.c.bf16 %v1218_v25, %v1216_v16  ;;  %v2287_v60 = vld [vmem:[%s2671_s5 + $0x20] sm:$0xff]   ;;  %v2288_v3 = vld [vmem:[%s2673_s7 + $0x8] sm:$0xff]  }
  0xd3   : > { %2166 = vmatprep.subr.msk.bf16.mxu0 %vm952_vm2, %v1993_v2  ;;  %v2289_v4 = vld [vmem:[%s2673_s7] sm:$0xff]  }
  0xdd   : > { %2079 = vmatmul.mubr.msk.bf16.vlgmr.msra.gmra.mrb[0].mxu0 %vm897_vm0, %v933_v7 }
  0xde   : > { %2083 = vmatpush3.bf16.msra.mxu0 %v1082_v8  ;;  %2084 = vmatprep.mubr.msk.bf16.mxu0 %vm897_vm0, %v1073_v0 }
  0xdf   : > { %2167 = vmatprep.subr.msk.bf16.mxu0 %vm952_vm2, %v1996_v33 }
  0xe9   : > { %2085 = vmatmul.mubr.msk.bf16.vlgmr.msra.gmra.mrb[0].mxu0 %vm897_vm0, %v1074_v13 }
  0xea   : > { %2089 = vmatpush3.bf16.msra.mxu0 %v1156_v14  ;;  %2090 = vmatprep.mubr.msk.bf16.mxu0 %vm897_vm0, %v1147_v15 }
  0xeb   : > { %2168 = vmatprep.subr.msk.bf16.mxu0 %vm952_vm2, %v1999_v17 }
  0xf5   : > { %2091 = vmatmul.mubr.msk.bf16.vlgmr.msra.gmra.mrb[0].mxu0 %vm897_vm0, %v1148_v22 }
  0xf6   : > { %2095 = vmatpush3.bf16.msra.mxu0 %v1230_v23  ;;  %2096 = vmatprep.mubr.msk.bf16.mxu0 %vm897_vm0, %v1221_v24 }
  0xf7   : > { %2130 = vmatprep.subr.bf16.mxu0 %v2300_v61 }
 0x101   : > { %2097 = vmatmul.mubr.msk.bf16.vlgmr.msra.gmra.mrb[0].mxu0 %vm897_vm0, %v1222_v26  ;;  %v2021_v26 = vld [vmem:[%s2672_s6] ss:$0 sm:$0xff] }
 0x102   : > { %2132 = vmatprep.mubr.msk.bf16.mxu0 %vm2301_vm5, %v2300_v61  ;;  %2131 = vmatpush3.bf16.msra.mxu0 %v2288_v3 }
 0x103   : > { %2142 = vmatprep.subr.bf16.mxu0 %v2300_v61 }
 0x1d4   : > { %v2098_v29 = vpop.f32.mrb[0].mxu0 }
 0x1d5   : > { %v1294_v30 = vadd.f32 %v2098_v29, %v2002_v28  ;;  %v1266_v31 = vpop.f32.mrb[1].mxu0 }
 0x1d6   : > { %v1292_v35 = vadd.f32 %v2002_v28, %v1266_v31  ;;  %v2099_v36 = vpop.f32.mrb[2].mxu0 }
 0x1d7   : > { %v1298_v37 = vmul.f32 0.1, %v1294_v30  ;;  %v1295_v38 = vadd.f32 %v2099_v36, %v2002_v28  ;;  %v1269_v39 = vpop.f32.mrb[3].mxu0 }
 0x1d8   : > { %v1296_v40 = vmul.f32 0.1, %v1292_v35  ;;  %v1293_v41 = vadd.f32 %v2002_v28, %v1269_v39 }
 0x1d9   : > { %v1302_v34 = vmax.f32 %v1294_v30, %v1298_v37  ;;  %v1299_v42 = vmul.f32 0.1, %v1295_v38 }
 0x1da   : > { %v1300_v43 = vmax.f32 %v1292_v35, %v1296_v40  ;;  %v1297_v44 = vmul.f32 0.1, %v1293_v41 }
 0x1db   : > { %1307 = vst.msk [vmem:[%s440_s28 + $0x10] sm:$0xff] %vm1304_vm3, %v1302_v34  ;;  %1317 = vst.msk [vmem:[#allocation3 + $0x12] sm:$0xff] %vm1304_vm3, %v1302_v34  ;;  %v1303_v45 = vmax.f32 %v1295_v38, %v1299_v42  ;;  %v2290_v34 = vld [vmem:[%s2673_s7 + $0x10] sm:$0xff]  }
 0x1dc   : > { %1305 = vst.msk [vmem:[%s440_s28] sm:$0xff] %vm1304_vm3, %v1300_v43  ;;  %1315 = vst.msk [vmem:[#allocation3 + $0x2] sm:$0xff] %vm1304_vm3, %v1300_v43  ;;  %v1301_v46 = vmax.f32 %v1293_v41, %v1297_v44 }
 0x1dd   : > { %1308 = vst.msk [vmem:[%s440_s28 + $0x18] sm:$0xff] %vm1304_vm3, %v1303_v45  ;;  %1318 = vst.msk [vmem:[#allocation3 + $0x1a] sm:$0xff] %vm1304_vm3, %v1303_v45 }
 0x1de   : > { %1306 = vst.msk [vmem:[%s440_s28 + $0x8] sm:$0xff] %vm1304_vm3, %v1301_v46  ;;  %1316 = vst.msk [vmem:[#allocation3 + $0xa] sm:$0xff] %vm1304_vm3, %v1301_v46 }
 0x1e4   : > { %v1436_v55 = vld [vmem:[#allocation3 + $0x12] ss:$2 sm:$0xff]  ;;  %v1496_v59 = vld [vmem:[#allocation3 + $0x13] ss:$2 sm:$0xff] }
 0x1e5   : > { %v1326_v47 = vld [vmem:[#allocation3 + $0x1] ss:$2 sm:$0xff]  ;;  %v1328_v48 = vld [vmem:[#allocation3 + $0x11] ss:$2 sm:$0xff]  ;;  %v1319_v32 = vld [vmem:[#allocation3] ss:$2 sm:$0xff] }
 0x1e6   : > { %v1332_v50 = vpack.c.bf16 %v1328_v48, %v1326_v47  ;;  %v1321_v51 = vld [vmem:[#allocation3 + $0x10] ss:$2 sm:$0xff]  ;;  %v1494_v58 = vld [vmem:[#allocation3 + $0x3] ss:$2 sm:$0xff] }
 0x1e7   : > { %v1324_v53 = vpack.c.bf16 %v1321_v51, %v1319_v32  ;;  %v1434_v54 = vld [vmem:[#allocation3 + $0x2] ss:$2 sm:$0xff]  ;;  %v1500_v62 = vpack.c.bf16 %v1496_v59, %v1494_v58 }
 0x1e8   : > { %2103 = vmatmul.mubr.msk.bf16.vlgmr.msra.gmra.mrb[0].mxu1 %vm1304_vm3, %v1332_v50  ;;  %v1440_v57 = vpack.c.bf16 %v1436_v55, %v1434_v54  ;;  %v1554_v63 = vld [vmem:[#allocation3 + $0x4] ss:$2 sm:$0xff]  ;;  %v1556_v1 = vld [vmem:[#allocation3 + $0x14] ss:$2 sm:$0xff] }
 0x1e9   : > { %2107 = vmatpush3.bf16.msra.mxu1 %v2284_v49  ;;  %2108 = vmatprep.mubr.msk.bf16.mxu1 %vm2301_vm5, %v2300_v61  ;;  %v1560_v2 = vpack.c.bf16 %v1556_v1, %v1554_v63 }
 0x1ea   : > { %2112 = vmatprep.subr.bf16.mxu1 %v2300_v61 }
 0x1f0   : > { %2109 = vmatmul.mubr.msk.bf16.vlgmr.msra.gmra.mrb[4].mxu1 %vm1304_vm3, %v1324_v53 }
 0x1f1   : > { %2113 = vmatpush3.bf16.msra.mxu1 %v2285_v52  ;;  %2114 = vmatprep.mubr.msk.bf16.mxu1 %vm2301_vm5, %v2300_v61 }
 0x1f2   : > { %2118 = vmatprep.subr.bf16.mxu1 %v2300_v61 }
 0x1f8   : > { %2115 = vmatmul.mubr.msk.bf16.vlgmr.msra.gmra.mrb[8].mxu1 %vm1304_vm3, %v1440_v57 }
 0x1f9   : > { %2119 = vmatpush3.bf16.msra.mxu1 %v2286_v56  ;;  %2120 = vmatprep.mubr.msk.bf16.mxu1 %vm2301_vm5, %v2300_v61 }
 0x1fa   : > { %2124 = vmatprep.subr.bf16.mxu1 %v2300_v61 }
 0x200   : > { %2121 = vmatmul.mubr.msk.bf16.vlgmr.msra.gmra.mrb[12].mxu1 %vm1304_vm3, %v1500_v62 }
 0x201   : > { %2125 = vmatpush3.bf16.msra.mxu1 %v2287_v60  ;;  %2126 = vmatprep.mubr.msk.bf16.mxu1 %vm2301_vm5, %v2300_v61 }
 0x202   : > { %2136 = vmatprep.subr.bf16.mxu1 %v2300_v61 }
 0x208   : > { %2127 = vmatmul.mubr.msk.bf16.vlgmr.msra.gmra.mrb[16].mxu1 %vm1304_vm3, %v1560_v2 }
 0x209   : > { %2138 = vmatprep.mubr.msk.bf16.mxu1 %vm2301_vm5, %v2300_v61  ;;  %2137 = vmatpush3.bf16.msra.mxu1 %v2289_v4 }
 0x2bb   : > { %v1376_v5 = vpop.f32.mrb[0].mxu1 }
 0x2bc   : > { %v2104_v6 = vpop.f32.mrb[1].mxu1 }
 0x2bd   : > { %v1379_v7 = vpop.f32.mrb[2].mxu1 }
 0x2be   : > { %v2105_v8 = vpop.f32.mrb[3].mxu1 }
 0x2c3   : > { %v1426_v0 = vpop.f32.mrb[4].mxu1 }
 0x2c4   : > { %v1427_v33 = vadd.f32 %v1426_v0, %v1376_v5  ;;  %v2110_v9 = vpop.f32.mrb[5].mxu1 }
 0x2c5   : > { %v1429_v10 = vpop.f32.mrb[6].mxu1 }
 0x2c6   : > { %v1430_v11 = vadd.f32 %v1429_v10, %v1379_v7  ;;  %v2111_v12 = vpop.f32.mrb[7].mxu1 }
 0x2cb   : > { %v1484_v13 = vpop.f32.mrb[8].mxu1 }
 0x2cc   : > { %v1491_v14 = vadd.f32 %v1484_v13, %v1427_v33  ;;  %v2116_v15 = vpop.f32.mrb[9].mxu1 }
 0x2cd   : > { %v1487_v17 = vpop.f32.mrb[10].mxu1 }
 0x2ce   : > { %v1492_v19 = vadd.f32 %v1487_v17, %v1430_v11  ;;  %v2117_v20 = vpop.f32.mrb[11].mxu1 }
 0x2d3   : > { %v1544_v21 = vpop.f32.mrb[12].mxu1 }
 0x2d4   : > { %v1551_v22 = vadd.f32 %v1544_v21, %v1491_v14  ;;  %v2122_v23 = vpop.f32.mrb[13].mxu1 }
 0x2d5   : > { %v1547_v18 = vpop.f32.mrb[14].mxu1 }
 0x2d6   : > { %v1552_v24 = vadd.f32 %v1547_v18, %v1492_v19  ;;  %v2123_v16 = vpop.f32.mrb[15].mxu1 }
 0x2db   : > { %v1604_v25 = vpop.f32.mrb[16].mxu1 }
 0x2dc   : > { %v1611_v27 = vadd.f32 %v1604_v25, %v1551_v22  ;;  %v2128_v28 = vpop.f32.mrb[17].mxu1 }
 0x2dd   : > { %v1607_v29 = vpop.f32.mrb[18].mxu1 }
 0x2de   : > { %v1620_v30 = vadd.f32 %v2021_v26, %v1611_v27  ;;  %v1612_v31 = vadd.f32 %v1607_v29, %v1552_v24  ;;  %v2129_v35 = vpop.f32.mrb[19].mxu1 }
 0x2e0   : > { %v1622_v36 = vmul.f32 0.1, %v1620_v30  ;;  %v1621_v37 = vadd.f32 %v2021_v26, %v1612_v31 }
 0x2e2   : > { %v1624_v38 = vmax.f32 %v1620_v30, %v1622_v36  ;;  %v1623_v39 = vmul.f32 0.1, %v1621_v37 }
 0x2e4   : > { %1626 = vst.msk [vmem:[%s445_s30] sm:$0xff] %vm1304_vm3, %v1624_v38  ;;  %1632 = vst.msk [vmem:[#allocation4 + $0x1] sm:$0xff] %vm1304_vm3, %v1624_v38  ;;  %v1625_v40 = vmax.f32 %v1621_v37, %v1623_v39 }
 0x2e6   : > { %1627 = vst.msk [vmem:[%s445_s30 + $0x8] sm:$0xff] %vm1304_vm3, %v1625_v40  ;;  %1633 = vst.msk [vmem:[#allocation4 + $0x9] sm:$0xff] %vm1304_vm3, %v1625_v40 }
 0x2eb   : > { %v1639_v41 = vld [vmem:[#allocation4 + $0x1] sm:$0xff] }
 0x2ec   : > { %v1634_v43 = vld [vmem:[#allocation4] sm:$0xff] }
 0x2ed   : > { %v1640_v42 = vld [vmem:[#allocation4 + $0x9] sm:$0xff] }
 0x2ee   : > { %v1635_v44 = vld [vmem:[#allocation4 + $0x8] sm:$0xff]  ;;  %v1644_v45 = vpack.c.bf16 %v1640_v42, %v1639_v41 }
 0x2ef   : > { %v1638_v46 = vpack.c.bf16 %v1635_v44, %v1634_v43  ;;  %v1745_v47 = vld [vmem:[#allocation4 + $0x2] sm:$0xff]  ;;  %v1746_v48 = vld [vmem:[#allocation4 + $0xa] sm:$0xff] }
 0x2f0   : > { %2133 = vmatmul.mubr.msk.bf16.vlgmr.msra.gmra.mrb[4].mxu0 %vm1304_vm3, %v1644_v45  ;;  %v1750_v49 = vpack.c.bf16 %v1746_v48, %v1745_v47 }
 0x2f1   : > { %2139 = vmatmul.mubr.msk.bf16.vlgmr.msra.gmra.mrb[20].mxu1 %vm1304_vm3, %v1638_v46  ;;  %2143 = vmatpush3.bf16.msra.mxu0 %v2290_v34 }
 0x2f2   : > { %2144 = vmatprep.mubr.msk.bf16.mxu0 %vm2301_vm5, %v2300_v61  ;;  %v2032_v61 = vld [vmem:[%s2674_s8] ss:$0 sm:$0xff] }
 0x2f8   : > { %2145 = vmatmul.mubr.msk.bf16.vlgmr.msra.gmra.mrb[8].mxu0 %vm1304_vm3, %v1750_v49 }
 0x3c3   : > { %v1688_v50 = vpop.f32.mrb[4].mxu0 }
 0x3c4   : > { %v1738_v32 = vpop.f32.mrb[20].mxu1  ;;  %v2134_v52 = vpop.f32.mrb[5].mxu0 }
 0x3c5   : > { %v1739_v51 = vadd.f32 %v1738_v32, %v1688_v50  ;;  %v2140_v53 = vpop.f32.mrb[21].mxu1  ;;  %v1691_v54 = vpop.f32.mrb[6].mxu0 }
 0x3c6   : > { %v1741_v55 = vpop.f32.mrb[22].mxu1  ;;  %v2135_v57 = vpop.f32.mrb[7].mxu0 }
 0x3c7   : > { %v1742_v56 = vadd.f32 %v1741_v55, %v1691_v54  ;;  %v2141_v58 = vpop.f32.mrb[23].mxu1 }
 0x3cb   : > { %v1794_v59 = vpop.f32.mrb[8].mxu0 }
 0x3cc   : > { %v1801_v60 = vadd.f32 %v1794_v59, %v1739_v51  ;;  %v2146_v62 = vpop.f32.mrb[9].mxu0 }
 0x3cd   : > { %v1797_v63 = vpop.f32.mrb[10].mxu0 }
 0x3ce   : > { %v1810_v1 = vadd.f32 %v2032_v61, %v1801_v60  ;;  %v1802_v2 = vadd.f32 %v1797_v63, %v1742_v56  ;;  %v2147_v3 = vpop.f32.mrb[11].mxu0 }
 0x3d0   : > { %1813 = vst.msk [vmem:[%s450_s19] sm:$0xff] %vm1812_vm7, %v1810_v1  ;;  %v1811_v4 = vadd.f32 %v2032_v61, %v1802_v2 }
 0x3d2   : > { %1814 = vst.msk [vmem:[%s450_s19 + $0x8] sm:$0xff] %vm1812_vm7, %v1811_v4 }
 0x3d3 PF: > { %s23_s21 = sadd.s32 1, %s2297_s21  }
 0x3d4   : > { %p20_p4 = scmp.ge.s32.totalorder %s23_s21, 4  }
 0x3d6   :  { %22 = sbr.rel (!%p20_p4) target bundleno = 1 (0x1), region = 164 }

</bundles_post_ra>
